<compile_context>
chip_gen: v7x
topology: tpu7x:2x2x1
jax: 0.10.0
libtpu: 0.0.40
codegen_flags: <defaults>
</compile_context>

<pallas_src>
import functools

import jax
import jax.numpy as jnp
from jax.experimental import pallas as pl
from jax.experimental.pallas import tpu as pltpu


_EPS = 1e-5
_NEG_SLOPE = 0.2
_FUSED_MAX_B = 8192          # h2 scratch = B*256*4 bytes (8 MiB at the cap)


def _leaky_relu(x):
    return jnp.where(x > 0.0, x, _NEG_SLOPE * x)


# ---------------------------------------------------------------------------
# Fused single-pass kernel
# ---------------------------------------------------------------------------
def _fused_kernel(x_ref, w1_ref, b1_ref, w2_ref, b2_ref, g_ref, beta_ref,
                  w3_ref, b3_ref, o_ref, h2_scr, s_scr, ss_scr,
                  *, inv_batch, tile_b, nt):
    i = pl.program_id(0)

    @pl.when(i == 0)
    def _():
        s_scr[...] = jnp.zeros_like(s_scr)
        ss_scr[...] = jnp.zeros_like(ss_scr)

    # Linear(784->512) + LeakyReLU(0.2). x loaded f32, cast to bf16 on the VPU
    # (free under the MXU) so HBM only sees the raw input once.
    x = x_ref[...].astype(jnp.bfloat16)
    h1 = jnp.dot(x, w1_ref[...], preferred_element_type=jnp.float32) + b1_ref[...]
    h1 = _leaky_relu(h1)

    # Linear(512->256) -> pre-BatchNorm activations (f32 accumulation).
    h2 = jnp.dot(h1.astype(jnp.bfloat16), w2_ref[...],
                 preferred_element_type=jnp.float32) + b2_ref[...]

    # Persist this batch tile in VMEM scratch (no HBM round-trip).
    h2_scr[i] = h2

    # Running per-feature batch statistics (full-ref updates).
    s_scr[...] += jnp.sum(h2, axis=0, keepdims=True)
    ss_scr[...] += jnp.sum(h2 * h2, axis=0, keepdims=True)

    # Epilogue: BatchNorm (global batch stats) + LeakyReLU + Linear(256->1)
    # + Sigmoid over all tiles held in the scratch, written once.
    @pl.when(i == nt - 1)
    def _():
        mu = s_scr[...] * inv_batch
        var = jnp.maximum(ss_scr[...] * inv_batch - mu * mu, 0.0)
        inv = jax.lax.rsqrt(var + _EPS) * g_ref[...]
        shift = beta_ref[...] - mu * inv
        w3 = w3_ref[...]
        b3 = b3_ref[0, 0]
        for t in range(nt):                       # static loop over batch tiles
            h = h2_scr[t] * inv + shift
            h = _leaky_relu(h)
            h3 = jnp.sum(h * w3, axis=-1, keepdims=True) + b3
            o_ref[t * tile_b:(t + 1) * tile_b, :] = 1.0 / (1.0 + jnp.exp(-h3))


# ---------------------------------------------------------------------------
# Two-pass fallback (large B): pass 1 body matmuls + stats, pass 2 BN + head
# ---------------------------------------------------------------------------
def _body_kernel(x_ref, w1_ref, b1_ref, w2_ref, b2_ref, h2_ref, stats_ref,
                 s_scr, ss_scr):
    i = pl.program_id(0)

    @pl.when(i == 0)
    def _():
        s_scr[...] = jnp.zeros_like(s_scr)
        ss_scr[...] = jnp.zeros_like(ss_scr)

    x = x_ref[...].astype(jnp.bfloat16)
    h1 = _leaky_relu(jnp.dot(x, w1_ref[...], preferred_element_type=jnp.float32)
                     + b1_ref[...])
    h2 = jnp.dot(h1.astype(jnp.bfloat16), w2_ref[...],
                 preferred_element_type=jnp.float32) + b2_ref[...]

    h2_ref[...] = h2.astype(h2_ref.dtype)         # bf16 round-trip to HBM
    s_scr[...] += jnp.sum(h2, axis=0, keepdims=True)
    ss_scr[...] += jnp.sum(h2 * h2, axis=0, keepdims=True)

    @pl.when(i == pl.num_programs(0) - 1)
    def _():
        stats_ref[0:1, :] = s_scr[...]
        stats_ref[1:2, :] = ss_scr[...]


def _bn_head_kernel(h2_ref, stats_ref, g_ref, beta_ref, w3_ref, b3_ref, o_ref,
                    *, inv_batch):
    h2 = h2_ref[...].astype(jnp.float32)
    stats = stats_ref[...]
    mu = stats[0:1, :] * inv_batch
    var = jnp.maximum(stats[1:2, :] * inv_batch - mu * mu, 0.0)
    inv = jax.lax.rsqrt(var + _EPS) * g_ref[...]
    shift = beta_ref[...] - mu * inv
    h = _leaky_relu(h2 * inv + shift)
    h3 = jnp.sum(h * w3_ref[...], axis=-1, keepdims=True) + b3_ref[0, 0]
    o_ref[...] = 1.0 / (1.0 + jnp.exp(-h3))


# ---------------------------------------------------------------------------
# Wrapper
# ---------------------------------------------------------------------------
def _pick_tile_b(B, tile_b=None):
    """Largest divisor of B that is a multiple of 8 and <= 512 (else B)."""
    if tile_b is not None and B % tile_b == 0 and (tile_b % 8 == 0 or tile_b == B):
        return tile_b
    best = None
    for t in range(8, min(512, B) + 1, 8):
        if B % t == 0:
            best = t
    return best if best is not None else B


def discriminator_forward(x_nchw, params, tile_b=None, force_two_pass=False):
    """x_nchw: (B, 1, 28, 28) float32. Returns (B, 1) float32 probabilities."""
    B = x_nchw.shape[0]
    x = x_nchw.reshape(B, -1).astype(jnp.float32)   # (B, 784) row-major
    K = x.shape[1]

    w1, b1, w2, b2, gamma, beta, w3, b3 = params
    # MXU operands in bf16 (no-op if params are already stored in bf16).
    w1 = w1.astype(jnp.bfloat16)
    w2 = w2.astype(jnp.bfloat16)

    H1, H2 = w1.shape[1], w2.shape[1]               # 512, 256
    tile_b = _pick_tile_b(B, tile_b)
    nt = B // tile_b

    const = lambda i: (0, 0)

    if not force_two_pass and B <= _FUSED_MAX_B:
        kernel = functools.partial(_fused_kernel, inv_batch=1.0 / B,
                                   tile_b=tile_b, nt=nt)
        return pl.pallas_call(
            kernel,
            grid=(nt,),
            in_specs=[
                pl.BlockSpec((tile_b, K), lambda i: (i, 0)),        # x tile (f32)
                pl.BlockSpec((K, H1), const),                       # w1 (resident)
                pl.BlockSpec((1, H1), const),                       # b1
                pl.BlockSpec((H1, H2), const),                      # w2 (resident)
                pl.BlockSpec((1, H2), const),                       # b2
                pl.BlockSpec((1, H2), const),                       # gamma
                pl.BlockSpec((1, H2), const),                       # beta
                pl.BlockSpec((1, H2), const),                       # w3 row
                pl.BlockSpec(memory_space=pltpu.MemorySpace.SMEM),  # b3 scalar
            ],
            out_specs=pl.BlockSpec((B, 1), const),                  # resident output
            out_shape=jax.ShapeDtypeStruct((B, 1), jnp.float32),
            scratch_shapes=[
                pltpu.VMEM((nt, tile_b, H2), jnp.float32),          # h2 (persistent)
                pltpu.VMEM((1, H2), jnp.float32),                   # sum
                pltpu.VMEM((1, H2), jnp.float32),                   # sum of squares
            ],
            compiler_params=pltpu.CompilerParams(
                dimension_semantics=("arbitrary",)),
        )(x, w1, b1, w2, b2, gamma, beta, w3, b3)

    # ---- Large-B fallback: two passes with a bf16 h2 round-trip ----
    h2, stats = pl.pallas_call(
        _body_kernel,
        grid=(nt,),
        in_specs=[
            pl.BlockSpec((tile_b, K), lambda i: (i, 0)),
            pl.BlockSpec((K, H1), const),
            pl.BlockSpec((1, H1), const),
            pl.BlockSpec((H1, H2), const),
            pl.BlockSpec((1, H2), const),
        ],
        out_specs=(
            pl.BlockSpec((tile_b, H2), lambda i: (i, 0)),
            pl.BlockSpec((2, H2), const),
        ),
        out_shape=(
            jax.ShapeDtypeStruct((B, H2), jnp.bfloat16),
            jax.ShapeDtypeStruct((2, H2), jnp.float32),
        ),
        scratch_shapes=[
            pltpu.VMEM((1, H2), jnp.float32),
            pltpu.VMEM((1, H2), jnp.float32),
        ],
        compiler_params=pltpu.CompilerParams(
            dimension_semantics=("arbitrary",)),
    )(x, w1, b1, w2, b2)

    out = pl.pallas_call(
        functools.partial(_bn_head_kernel, inv_batch=1.0 / B),
        grid=(nt,),
        in_specs=[
            pl.BlockSpec((tile_b, H2), lambda i: (i, 0)),
            pl.BlockSpec((2, H2), const),
            pl.BlockSpec((1, H2), const),
            pl.BlockSpec((1, H2), const),
            pl.BlockSpec((1, H2), const),
            pl.BlockSpec(memory_space=pltpu.MemorySpace.SMEM),
        ],
        out_specs=pl.BlockSpec((tile_b, 1), lambda i: (i, 0)),
        out_shape=jax.ShapeDtypeStruct((B, 1), jnp.float32),
        compiler_params=pltpu.CompilerParams(
            dimension_semantics=("parallel",)),
    )(h2, stats, gamma, beta, w3, b3)
    return out


# ---------------------------------------------------------------------------
# Parameters & pure-JAX reference
# ---------------------------------------------------------------------------
def init_params(key):
    """Deterministic synthetic parameters with PyTorch-default-style scaling."""
    ks = jax.random.split(key, 6)

    def linear(kw, kb, fan_in, fan_out):
        bound = 1.0 / (fan_in ** 0.5)
        w = jax.random.uniform(kw, (fan_in, fan_out), jnp.float32, -bound, bound)
        b = jax.random.uniform(kb, (1, fan_out), jnp.float32, -bound, bound)
        return w, b

    w1, b1 = linear(ks[0], ks[1], 784, 512)
    w2, b2 = linear(ks[2], ks[3], 512, 256)
    bound3 = 1.0 / (256.0 ** 0.5)
    w3 = jax.random.uniform(ks[4], (1, 256), jnp.float32, -bound3, bound3)  # row layout
    b3 = jax.random.uniform(ks[5], (1, 1), jnp.float32, -bound3, bound3)
    gamma = jnp.ones((1, 256), jnp.float32)     # BatchNorm1d affine defaults
    beta = jnp.zeros((1, 256), jnp.float32)
    return (w1, b1, w2, b2, gamma, beta, w3, b3)


def _reference_forward(x_nchw, params):
    """Pure-JAX reference mirroring the kernel's bf16-matmul / f32-accum policy."""
    w1, b1, w2, b2, gamma, beta, w3, b3 = params
    x = x_nchw.reshape(x_nchw.shape[0], -1)
    h = jnp.dot(x.astype(jnp.bfloat16), w1.astype(jnp.bfloat16),
                preferred_element_type=jnp.float32) + b1
    h = jnp.where(h > 0, h, 0.2 * h)
    h = jnp.dot(h.astype(jnp.bfloat16), w2.astype(jnp.bfloat16),
                preferred_element_type=jnp.float32) + b2
    mu = jnp.mean(h, axis=0, keepdims=True)
    var = jnp.mean((h - mu) ** 2, axis=0, keepdims=True)    # biased (training-mode)
    h = (h - mu) / jnp.sqrt(var + 1e-5) * gamma + beta
    h = jnp.where(h > 0, h, 0.2 * h)
    h = h @ w3.T + b3
    return jax.nn.sigmoid(h)


if __name__ == "__main__":
    key = jax.random.PRNGKey(0)
    k_param, k_x = jax.random.split(key)

    params = init_params(k_param)
    # Small MNIST-like batch: (B, C, H, W) = (16, 1, 28, 28) -> 784 features.
    B = 16
    x = jax.random.normal(k_x, (B, 1, 28, 28), jnp.float32)

    ref = _reference_forward(x, params)

    # Fused single-pass path (tile_b=8 -> 2 batch tiles, exercises accumulation
    # + last-step epilogue).
    out = discriminator_forward(x, params, tile_b=8)
    out = jax.block_until_ready(out)
    assert out.shape == (B, 1)
    err = float(jnp.max(jnp.abs(out - ref)))
    assert jnp.allclose(out, ref, atol=1e-4, rtol=1e-4), f"fused mismatch: {err}"

    # Large-B fallback path (bf16 h2 round-trip) -> looser tolerance.
    out2 = discriminator_forward(x, params, tile_b=8, force_two_pass=True)
    out2 = jax.block_until_ready(out2)
    err2 = float(jnp.max(jnp.abs(out2 - ref)))
    assert jnp.allclose(out2, ref, atol=3e-2, rtol=3e-2), f"two-pass mismatch: {err2}"

    print("KERNEL_OK")
</pallas_src>

<mosaic_0001>
module attributes {stable_mosaic.version = 11 : i64} {
  func.func @_fused_kernel(%arg0: i32, %arg1: memref<8x784xf32, #tpu.memory_space<vmem>>, %arg2: memref<784x512xbf16, #tpu.memory_space<vmem>>, %arg3: memref<1x512xf32, #tpu.memory_space<vmem>>, %arg4: memref<512x256xbf16, #tpu.memory_space<vmem>>, %arg5: memref<1x256xf32, #tpu.memory_space<vmem>>, %arg6: memref<1x256xf32, #tpu.memory_space<vmem>>, %arg7: memref<1x256xf32, #tpu.memory_space<vmem>>, %arg8: memref<1x256xf32, #tpu.memory_space<vmem>>, %arg9: memref<1x1xf32, #tpu.memory_space<smem>>, %arg10: memref<16x1xf32, #tpu.memory_space<vmem>>, %arg11: memref<2x8x256xf32, #tpu.memory_space<vmem>>, %arg12: memref<1x256xf32, #tpu.memory_space<vmem>>, %arg13: memref<1x256xf32, #tpu.memory_space<vmem>>) attributes {dimension_semantics = [#tpu.dimension_semantics<arbitrary>], iteration_bounds = array<i64: 2>, scalar_prefetch = 0 : i64, scratch_operands = 3 : i64, tpu.core_type = #tpu.core_type<tc>, window_params = [{transform_indices = @transform_0, window_bounds = array<i64: 8, 784>}, {pipeline_mode = #tpu.pipeline_mode<synchronous>, transform_indices = @transform_1, window_bounds = array<i64: 784, 512>}, {pipeline_mode = #tpu.pipeline_mode<synchronous>, transform_indices = @transform_2, window_bounds = array<i64: 1, 512>}, {pipeline_mode = #tpu.pipeline_mode<synchronous>, transform_indices = @transform_3, window_bounds = array<i64: 512, 256>}, {pipeline_mode = #tpu.pipeline_mode<synchronous>, transform_indices = @transform_4, window_bounds = array<i64: 1, 256>}, {pipeline_mode = #tpu.pipeline_mode<synchronous>, transform_indices = @transform_5, window_bounds = array<i64: 1, 256>}, {pipeline_mode = #tpu.pipeline_mode<synchronous>, transform_indices = @transform_6, window_bounds = array<i64: 1, 256>}, {pipeline_mode = #tpu.pipeline_mode<synchronous>, transform_indices = @transform_7, window_bounds = array<i64: 1, 256>}, {transform_indices = @transform_8, window_bounds = array<i64: 1, 1>}, {pipeline_mode = #tpu.pipeline_mode<synchronous>, transform_indices = @transform_9, window_bounds = array<i64: 16, 1>}]} {
    %c0_i32 = arith.constant 0 : i32
    %0 = arith.cmpi eq, %arg0, %c0_i32 : i32
    %1 = arith.extui %0 : i1 to i32
    %c0_i32_0 = arith.constant 0 : i32
    %2 = arith.cmpi ne, %1, %c0_i32_0 : i32
    scf.if %2 {
      %cst_26 = arith.constant 0.000000e+00 : f32
      %39 = vector.broadcast %cst_26 : f32 to vector<1x256xf32>
      %c0_27 = arith.constant 0 : index
      %c0_28 = arith.constant 0 : index
      %40 = vector.load %arg12[%c0_27, %c0_28] : memref<1x256xf32, #tpu.memory_space<vmem>>, vector<1x256xf32>
      tpu.vector_store %arg12[%c0_27, %c0_28], %39 {strides = array<i32>} : memref<1x256xf32, #tpu.memory_space<vmem>>, vector<1x256xf32>,
      %cst_29 = arith.constant 0.000000e+00 : f32
      %41 = vector.broadcast %cst_29 : f32 to vector<1x256xf32>
      %c0_30 = arith.constant 0 : index
      %c0_31 = arith.constant 0 : index
      %42 = vector.load %arg13[%c0_30, %c0_31] : memref<1x256xf32, #tpu.memory_space<vmem>>, vector<1x256xf32>
      tpu.vector_store %arg13[%c0_30, %c0_31], %41 {strides = array<i32>} : memref<1x256xf32, #tpu.memory_space<vmem>>, vector<1x256xf32>,
    } else {
    }
    %c0 = arith.constant 0 : index
    %c0_1 = arith.constant 0 : index
    %3 = vector.load %arg1[%c0, %c0_1] : memref<8x784xf32, #tpu.memory_space<vmem>>, vector<8x784xf32>
    %4 = arith.truncf %3 : vector<8x784xf32> to vector<8x784xbf16>
    %c0_2 = arith.constant 0 : index
    %c0_3 = arith.constant 0 : index
    %5 = vector.load %arg2[%c0_2, %c0_3] : memref<784x512xbf16, #tpu.memory_space<vmem>>, vector<784x512xbf16>
    %cst = arith.constant dense<0.000000e+00> : vector<8x512xf32>
    %6 = tpu.matmul %4, %5, %cst {dimension_numbers = #tpu.dot_dimension_numbers<[1], [0], [0], [1], [0, 0, 1, 1], [], []>} : vector<8x784xbf16>, vector<784x512xbf16>, vector<8x512xf32> -> vector<8x512xf32>
    %c0_4 = arith.constant 0 : index
    %c0_5 = arith.constant 0 : index
    %7 = vector.load %arg3[%c0_4, %c0_5] : memref<1x512xf32, #tpu.memory_space<vmem>>, vector<1x512xf32>
    %8 = vector.broadcast %7 : vector<1x512xf32> to vector<8x512xf32>
    %9 = arith.addf %6, %8 : vector<8x512xf32>
    %cst_6 = arith.constant 0.000000e+00 : f32
    %10 = vector.broadcast %cst_6 : f32 to vector<8x512xf32>
    %11 = arith.cmpf ogt, %9, %10 : vector<8x512xf32>
    %cst_7 = arith.constant 2.000000e-01 : f32
    %12 = vector.broadcast %cst_7 : f32 to vector<8x512xf32>
    %13 = arith.mulf %12, %9 : vector<8x512xf32>
    %14 = arith.select %11, %9, %13 : vector<8x512xi1>, vector<8x512xf32>
    %15 = arith.truncf %14 : vector<8x512xf32> to vector<8x512xbf16>
    %c0_8 = arith.constant 0 : index
    %c0_9 = arith.constant 0 : index
    %16 = vector.load %arg4[%c0_8, %c0_9] : memref<512x256xbf16, #tpu.memory_space<vmem>>, vector<512x256xbf16>
    %cst_10 = arith.constant dense<0.000000e+00> : vector<8x256xf32>
    %17 = tpu.matmul %15, %16, %cst_10 {dimension_numbers = #tpu.dot_dimension_numbers<[1], [0], [0], [1], [0, 0, 1, 1], [], []>} : vector<8x512xbf16>, vector<512x256xbf16>, vector<8x256xf32> -> vector<8x256xf32>
    %c0_11 = arith.constant 0 : index
    %c0_12 = arith.constant 0 : index
    %18 = vector.load %arg5[%c0_11, %c0_12] : memref<1x256xf32, #tpu.memory_space<vmem>>, vector<1x256xf32>
    %19 = vector.broadcast %18 : vector<1x256xf32> to vector<8x256xf32>
    %20 = arith.addf %17, %19 : vector<8x256xf32>
    %21 = arith.index_cast %arg0 : i32 to index
    %c0_13 = arith.constant 0 : index
    %c0_14 = arith.constant 0 : index
    %22 = vector.load %arg11[%21, %c0_13, %c0_14] : memref<2x8x256xf32, #tpu.memory_space<vmem>>, vector<1x8x256xf32>
    %23 = vector.shape_cast %22 : vector<1x8x256xf32> to vector<8x256xf32>
    %24 = vector.shape_cast %20 : vector<8x256xf32> to vector<1x8x256xf32>
    tpu.vector_store %arg11[%21, %c0_13, %c0_14], %24 {strides = array<i32>} : memref<2x8x256xf32, #tpu.memory_space<vmem>>, vector<1x8x256xf32>,
    %c0_15 = arith.constant 0 : index
    %c0_16 = arith.constant 0 : index
    %25 = vector.load %arg12[%c0_15, %c0_16] : memref<1x256xf32, #tpu.memory_space<vmem>>, vector<1x256xf32>
    %cst_17 = arith.constant dense<0.000000e+00> : vector<256xf32>
    %26 = vector.multi_reduction <add>, %20, %cst_17 [0] : vector<8x256xf32> to vector<256xf32>
    %27 = vector.shape_cast %26 : vector<256xf32> to vector<1x256xf32>
    %28 = arith.addf %25, %27 : vector<1x256xf32>
    %c0_18 = arith.constant 0 : index
    %c0_19 = arith.constant 0 : index
    %29 = vector.load %arg12[%c0_18, %c0_19] : memref<1x256xf32, #tpu.memory_space<vmem>>, vector<1x256xf32>
    tpu.vector_store %arg12[%c0_18, %c0_19], %28 {strides = array<i32>} : memref<1x256xf32, #tpu.memory_space<vmem>>, vector<1x256xf32>,
    %c0_20 = arith.constant 0 : index
    %c0_21 = arith.constant 0 : index
    %30 = vector.load %arg13[%c0_20, %c0_21] : memref<1x256xf32, #tpu.memory_space<vmem>>, vector<1x256xf32>
    %31 = arith.mulf %20, %20 : vector<8x256xf32>
    %cst_22 = arith.constant dense<0.000000e+00> : vector<256xf32>
    %32 = vector.multi_reduction <add>, %31, %cst_22 [0] : vector<8x256xf32> to vector<256xf32>
    %33 = vector.shape_cast %32 : vector<256xf32> to vector<1x256xf32>
    %34 = arith.addf %30, %33 : vector<1x256xf32>
    %c0_23 = arith.constant 0 : index
    %c0_24 = arith.constant 0 : index
    %35 = vector.load %arg13[%c0_23, %c0_24] : memref<1x256xf32, #tpu.memory_space<vmem>>, vector<1x256xf32>
    tpu.vector_store %arg13[%c0_23, %c0_24], %34 {strides = array<i32>} : memref<1x256xf32, #tpu.memory_space<vmem>>, vector<1x256xf32>,
    %c1_i32 = arith.constant 1 : i32
    %36 = arith.cmpi eq, %arg0, %c1_i32 : i32
    %37 = arith.extui %36 : i1 to i32
    %c0_i32_25 = arith.constant 0 : i32
    %38 = arith.cmpi ne, %37, %c0_i32_25 : i32
    scf.if %38 {
      %c0_26 = arith.constant 0 : index
      %c0_27 = arith.constant 0 : index
      %39 = vector.load %arg12[%c0_26, %c0_27] : memref<1x256xf32, #tpu.memory_space<vmem>>, vector<1x256xf32>
      %cst_28 = arith.constant 6.250000e-02 : f32
      %40 = vector.broadcast %cst_28 : f32 to vector<1x256xf32>
      %41 = arith.mulf %39, %40 : vector<1x256xf32>
      %c0_29 = arith.constant 0 : index
      %c0_30 = arith.constant 0 : index
      %42 = vector.load %arg13[%c0_29, %c0_30] : memref<1x256xf32, #tpu.memory_space<vmem>>, vector<1x256xf32>
      %cst_31 = arith.constant 6.250000e-02 : f32
      %43 = vector.broadcast %cst_31 : f32 to vector<1x256xf32>
      %44 = arith.mulf %42, %43 : vector<1x256xf32>
      %45 = arith.mulf %41, %41 : vector<1x256xf32>
      %46 = arith.subf %44, %45 : vector<1x256xf32>
      %cst_32 = arith.constant 0.000000e+00 : f32
      %47 = vector.broadcast %cst_32 : f32 to vector<1x256xf32>
      %48 = arith.maximumf %46, %47 : vector<1x256xf32>
      %cst_33 = arith.constant 9.99999974E-6 : f32
      %49 = vector.broadcast %cst_33 : f32 to vector<1x256xf32>
      %50 = arith.addf %48, %49 : vector<1x256xf32>
      %51 = math.rsqrt %50 : vector<1x256xf32>
      %c0_34 = arith.constant 0 : index
      %c0_35 = arith.constant 0 : index
      %52 = vector.load %arg6[%c0_34, %c0_35] : memref<1x256xf32, #tpu.memory_space<vmem>>, vector<1x256xf32>
      %53 = arith.mulf %51, %52 : vector<1x256xf32>
      %c0_36 = arith.constant 0 : index
      %c0_37 = arith.constant 0 : index
      %54 = vector.load %arg7[%c0_36, %c0_37] : memref<1x256xf32, #tpu.memory_space<vmem>>, vector<1x256xf32>
      %55 = arith.mulf %41, %53 : vector<1x256xf32>
      %56 = arith.subf %54, %55 : vector<1x256xf32>
      %c0_38 = arith.constant 0 : index
      %c0_39 = arith.constant 0 : index
      %57 = vector.load %arg8[%c0_38, %c0_39] : memref<1x256xf32, #tpu.memory_space<vmem>>, vector<1x256xf32>
      %c0_40 = arith.constant 0 : index
      %c0_41 = arith.constant 0 : index
      %58 = memref.load %arg9[%c0_40, %c0_41] : memref<1x1xf32, #tpu.memory_space<smem>>
      %c0_42 = arith.constant 0 : index
      %c0_43 = arith.constant 0 : index
      %c0_44 = arith.constant 0 : index
      %59 = vector.load %arg11[%c0_42, %c0_43, %c0_44] : memref<2x8x256xf32, #tpu.memory_space<vmem>>, vector<1x8x256xf32>
      %60 = vector.shape_cast %59 : vector<1x8x256xf32> to vector<8x256xf32>
      %61 = vector.broadcast %53 : vector<1x256xf32> to vector<8x256xf32>
      %62 = arith.mulf %60, %61 : vector<8x256xf32>
      %63 = vector.broadcast %56 : vector<1x256xf32> to vector<8x256xf32>
      %64 = arith.addf %62, %63 : vector<8x256xf32>
      %cst_45 = arith.constant 0.000000e+00 : f32
      %65 = vector.broadcast %cst_45 : f32 to vector<8x256xf32>
      %66 = arith.cmpf ogt, %64, %65 : vector<8x256xf32>
      %cst_46 = arith.constant 2.000000e-01 : f32
      %67 = vector.broadcast %cst_46 : f32 to vector<8x256xf32>
      %68 = arith.mulf %67, %64 : vector<8x256xf32>
      %69 = arith.select %66, %64, %68 : vector<8x256xi1>, vector<8x256xf32>
      %70 = vector.broadcast %57 : vector<1x256xf32> to vector<8x256xf32>
      %71 = arith.mulf %69, %70 : vector<8x256xf32>
      %cst_47 = arith.constant dense<0.000000e+00> : vector<8xf32>
      %72 = vector.multi_reduction <add>, %71, %cst_47 [1] : vector<8x256xf32> to vector<8xf32>
      %73 = vector.shape_cast %72 : vector<8xf32> to vector<8x1xf32>
      %74 = vector.broadcast %58 : f32 to vector<8x1xf32>
      %75 = arith.addf %73, %74 : vector<8x1xf32>
      %cst_48 = arith.constant 0.000000e+00 : f32
      %76 = vector.broadcast %cst_48 : f32 to vector<8x1xf32>
      %77 = arith.subf %76, %75 : vector<8x1xf32>
      %78 = math.exp %77 : vector<8x1xf32>
      %cst_49 = arith.constant 1.000000e+00 : f32
      %79 = vector.broadcast %cst_49 : f32 to vector<8x1xf32>
      %80 = arith.addf %79, %78 : vector<8x1xf32>
      %cst_50 = arith.constant 1.000000e+00 : f32
      %81 = vector.broadcast %cst_50 : f32 to vector<8x1xf32>
      %82 = arith.divf %81, %80 : vector<8x1xf32>
      %c0_51 = arith.constant 0 : index
      %c0_52 = arith.constant 0 : index
      %83 = vector.load %arg10[%c0_51, %c0_52] : memref<16x1xf32, #tpu.memory_space<vmem>>, vector<8x1xf32>
      tpu.vector_store %arg10[%c0_51, %c0_52], %82 {strides = array<i32>} : memref<16x1xf32, #tpu.memory_space<vmem>>, vector<8x1xf32>,
      %c1 = arith.constant 1 : index
      %c0_53 = arith.constant 0 : index
      %c0_54 = arith.constant 0 : index
      %84 = vector.load %arg11[%c1, %c0_53, %c0_54] : memref<2x8x256xf32, #tpu.memory_space<vmem>>, vector<1x8x256xf32>
      %85 = vector.shape_cast %84 : vector<1x8x256xf32> to vector<8x256xf32>
      %86 = vector.broadcast %53 : vector<1x256xf32> to vector<8x256xf32>
      %87 = arith.mulf %85, %86 : vector<8x256xf32>
      %88 = vector.broadcast %56 : vector<1x256xf32> to vector<8x256xf32>
      %89 = arith.addf %87, %88 : vector<8x256xf32>
      %cst_55 = arith.constant 0.000000e+00 : f32
      %90 = vector.broadcast %cst_55 : f32 to vector<8x256xf32>
      %91 = arith.cmpf ogt, %89, %90 : vector<8x256xf32>
      %cst_56 = arith.constant 2.000000e-01 : f32
      %92 = vector.broadcast %cst_56 : f32 to vector<8x256xf32>
      %93 = arith.mulf %92, %89 : vector<8x256xf32>
      %94 = arith.select %91, %89, %93 : vector<8x256xi1>, vector<8x256xf32>
      %95 = vector.broadcast %57 : vector<1x256xf32> to vector<8x256xf32>
      %96 = arith.mulf %94, %95 : vector<8x256xf32>
      %cst_57 = arith.constant dense<0.000000e+00> : vector<8xf32>
      %97 = vector.multi_reduction <add>, %96, %cst_57 [1] : vector<8x256xf32> to vector<8xf32>
      %98 = vector.shape_cast %97 : vector<8xf32> to vector<8x1xf32>
      %99 = vector.broadcast %58 : f32 to vector<8x1xf32>
      %100 = arith.addf %98, %99 : vector<8x1xf32>
      %cst_58 = arith.constant 0.000000e+00 : f32
      %101 = vector.broadcast %cst_58 : f32 to vector<8x1xf32>
      %102 = arith.subf %101, %100 : vector<8x1xf32>
      %103 = math.exp %102 : vector<8x1xf32>
      %cst_59 = arith.constant 1.000000e+00 : f32
      %104 = vector.broadcast %cst_59 : f32 to vector<8x1xf32>
      %105 = arith.addf %104, %103 : vector<8x1xf32>
      %cst_60 = arith.constant 1.000000e+00 : f32
      %106 = vector.broadcast %cst_60 : f32 to vector<8x1xf32>
      %107 = arith.divf %106, %105 : vector<8x1xf32>
      %c8 = arith.constant 8 : index
      %c0_61 = arith.constant 0 : index
      %108 = vector.load %arg10[%c8, %c0_61] : memref<16x1xf32, #tpu.memory_space<vmem>>, vector<8x1xf32>
      tpu.vector_store %arg10[%c8, %c0_61], %107 {strides = array<i32>} : memref<16x1xf32, #tpu.memory_space<vmem>>, vector<8x1xf32>,
    } else {
    }
    return
  }
  func.func @transform_0(%arg0: i32) -> (i32, i32) {
    %c0_i32 = arith.constant 0 : i32
    %c0_i32_0 = arith.constant 0 : i32
    return %arg0, %c0_i32 : i32, i32
  }
  func.func @transform_1(%arg0: i32) -> (i32, i32) {
    %c0_i32 = arith.constant 0 : i32
    %c0_i32_0 = arith.constant 0 : i32
    %c0_i32_1 = arith.constant 0 : i32
    return %c0_i32, %c0_i32_0 : i32, i32
  }
  func.func @transform_2(%arg0: i32) -> (i32, i32) {
    %c0_i32 = arith.constant 0 : i32
    %c0_i32_0 = arith.constant 0 : i32
    %c0_i32_1 = arith.constant 0 : i32
    return %c0_i32, %c0_i32_0 : i32, i32
  }
  func.func @transform_3(%arg0: i32) -> (i32, i32) {
    %c0_i32 = arith.constant 0 : i32
    %c0_i32_0 = arith.constant 0 : i32
    %c0_i32_1 = arith.constant 0 : i32
    return %c0_i32, %c0_i32_0 : i32, i32
  }
  func.func @transform_4(%arg0: i32) -> (i32, i32) {
    %c0_i32 = arith.constant 0 : i32
    %c0_i32_0 = arith.constant 0 : i32
    %c0_i32_1 = arith.constant 0 : i32
    return %c0_i32, %c0_i32_0 : i32, i32
  }
  func.func @transform_5(%arg0: i32) -> (i32, i32) {
    %c0_i32 = arith.constant 0 : i32
    %c0_i32_0 = arith.constant 0 : i32
    %c0_i32_1 = arith.constant 0 : i32
    return %c0_i32, %c0_i32_0 : i32, i32
  }
  func.func @transform_6(%arg0: i32) -> (i32, i32) {
    %c0_i32 = arith.constant 0 : i32
    %c0_i32_0 = arith.constant 0 : i32
    %c0_i32_1 = arith.constant 0 : i32
    return %c0_i32, %c0_i32_0 : i32, i32
  }
  func.func @transform_7(%arg0: i32) -> (i32, i32) {
    %c0_i32 = arith.constant 0 : i32
    %c0_i32_0 = arith.constant 0 : i32
    %c0_i32_1 = arith.constant 0 : i32
    return %c0_i32, %c0_i32_0 : i32, i32
  }
  func.func @transform_8(%arg0: i32) -> (i32, i32) {
    %c0_i32 = arith.constant 0 : i32
    %c0_i32_0 = arith.constant 0 : i32
    %c0_i32_1 = arith.constant 0 : i32
    return %c0_i32, %c0_i32_0 : i32, i32
  }
  func.func @transform_9(%arg0: i32) -> (i32, i32) {
    %c0_i32 = arith.constant 0 : i32
    %c0_i32_0 = arith.constant 0 : i32
    %c0_i32_1 = arith.constant 0 : i32
    return %c0_i32, %c0_i32_0 : i32, i32
  }
}

</mosaic_0001>

<bundles_post_ra>
// kernel: tpu_custom_call.1
= control target key start
LH: loop header
LB: loop body
LE: loop exit
PB: predicated region body
PF: predicated region fallthrough
CT: control target
= control target key end

     0   :  { %s3890_s0 = inlined_call_operand.hbm [shape: f32[16,784], index: 0, kind: input, shape index: {}]   ;;  %s3891_s1 = inlined_call_operand.hbm [shape: bf16[784,512], index: 1, kind: input, shape index: {}]   ;;  %s3892_s2 = inlined_call_operand.vmem [shape: f32[1,512], index: 2, kind: input, shape index: {}]   ;;  %s3893_s3 = inlined_call_operand.hbm [shape: bf16[512,256], index: 3, kind: input, shape index: {}]   ;;  %s3894_s4 = inlined_call_operand.vmem [shape: f32[1,256], index: 4, kind: input, shape index: {}]   ;;  %s3895_s5 = inlined_call_operand.vmem [shape: f32[1,256], index: 5, kind: input, shape index: {}]   ;;  %s3896_s6 = inlined_call_operand.vmem [shape: f32[1,256], index: 6, kind: input, shape index: {}]   ;;  %s3897_s7 = inlined_call_operand.vmem [shape: f32[1,256], index: 7, kind: input, shape index: {}]   ;;  %s3898_s8 = inlined_call_operand.<no memory space> [shape: f32[1,1], index: 8, kind: input, shape index: {}]   ;;  %s3899_s9 = inlined_call_operand.vmem [shape: f32[16,1], index: 9, kind: output, shape index: {}]  }
   0x1   :  { %14 = sst [smem:[#allocation5]] %s3898_s8 }
   0x2   :  { %15 = vsyncpa [#allocation7], 0 }
   0x3   :  { %17 = vsyncpa [#allocation7 + $0x1], 0 }
   0x4   :  { %18 = vsyncpa [#allocation9], 0  ;;  %s3627_s11 = smov 0   ;;  %s3629_s12 = smov 0  }
   0x5   :  { %s3631_s13 = smov 0   ;;  %s3633_s14 = smov 0  }
   0x6 LB: > { %s3646_s8 = sadd.s32 4294967295, %s3562_s14   ;;  %p44_p0 = scmp.ne.s32.totalorder %s3554_s12, %s3550_s11  ;;  %s3562_s14 = sphi %s3633_s14, %s3916_s14   ;;  %s3558_s13 = sphi %s3631_s13, %s3915_s13   ;;  %s3554_s12 = sphi %s3629_s12, %s3914_s12   ;;  %s3550_s11 = sphi %s3627_s11, %s3913_s11  }
   0x7   : > { %p3900_p1 = scmp.eq.s32.totalorder %s3646_s8, 0  ;;  %p2659_p2 = scmp.ge.s32.totalorder %s3562_s14, 1 }
   0x8   : > { %p244_p3 = scmp.lt.s32.totalorder %s3562_s14, 3  ;;  %s3564_s17 = smov [#allocation8]  }
   0x9   : > { %p3655_p5 = por %p3900_p1, %p44_p0  ;;  %s256_s18 = sshll.u32 %s3564_s17, 4  ;;  %s257_s18 = int_to_ptr.vmem [resolvable:$true] %s256_s18 }
   0xa   : > { %p3659_p6 = pnand %p2659_p2, %p244_p3  ;;  %s3565_s20 = smov [#allocation10]  }
   0xb   : > { %s3903_s15 = scalar_select %p3655_p5, 1, 0 }
   0xc   : > { %s3904_s16 = scalar_select %p3659_p6, 1, 0 }
   0xd   : > { %p2981_p7 = pneg %p3659_p6  ;;  %s272_s21 = sshll.u32 %s3565_s20, 4  ;;  %s3671_s21 = int_to_ptr.vmem [resolvable:$true] %s272_s21 }
   0xe   : > { %s3438_s24 = scalar_lea.hbm %s3891_s1, 25088 }
   0xf   : > { %p3667_p8 = pnand %p2981_p7, %p3900_p1  ;;  %p3439_p9 = scmp.ne.s32.totalorder %s3891_s1, %s3438_s24 }
  0x10   : > { %p3445_p13 = scmp.lt.u32.totalorder %s3438_s24, %s3891_s1 }
  0x11   : > { %p3440_p10 = pneg %p3667_p8 }
  0x13   : > { %p3441_p11 = pnand %p3440_p10, %p3439_p9 }
  0x15   : > { %p3442_p12 = pneg %p3441_p11 }
  0x17   : > { %p3447_p0 = pnand %p3445_p13, %p3442_p12 }
  0x19   : > { %3450 = shalt.err (!%p3447_p0)
}
  0x1a   : > { %s3451_s29 = scalar_lea.vmem %s257_s18, 25088  ;;  %p3459_p4 = scmp.lt.s32.totalorder %s257_s18, %s257_s18 }
  0x1b   : > { %p3452_p2 = scmp.ne.s32.totalorder %s257_s18, %s3451_s29  ;;  %p3460_p1 = scmp.lt.s32.totalorder %s3451_s29, %s3451_s29 }
  0x1d   : > { %p3454_p3 = pnand %p3452_p2, %p3440_p10  ;;  %p3461_p5 = por %p3460_p1, %p3459_p4 }
  0x1f   : > { %p3455_p7 = pneg %p3454_p3 }
  0x21   : > { %p3462_p6 = pnand %p3461_p5, %p3455_p7 }
  0x23   : > { %3465 = shalt.err (!%p3462_p6)
}
  0x24   : > { %s3566_s30 = smov 256   ;;  %s3567_s10 = smov 16  }
  0x25   : > { %2984 = dma.hbm_to_vmem [thread:$0]  (!%p3667_p8), %s3891_s1, 25088, %s257_s18, [#allocation9], %s3566_s30, %s3566_s30, %s3567_s10  }
  0x26   : > { %s3466_s23 = scalar_lea.hbm %s3893_s3, 8192 }
  0x27   : > { %p3467_p9 = scmp.ne.s32.totalorder %s3893_s3, %s3466_s23  ;;  %p3473_p5 = scmp.lt.u32.totalorder %s3466_s23, %s3893_s3 }
  0x29   : > { %p3469_p1 = pnand %p3467_p9, %p3440_p10 }
  0x2b   : > { %p3470_p4 = pneg %p3469_p1 }
  0x2d   : > { %p3475_p6 = pnand %p3473_p5, %p3470_p4 }
  0x2f   : > { %3478 = shalt.err (!%p3475_p6)
}
  0x30   : > { %s3479_s18 = scalar_lea.vmem %s3671_s21, 8192  ;;  %p3487_p0 = scmp.lt.s32.totalorder %s3671_s21, %s3671_s21 }
  0x31   : > { %p3480_p11 = scmp.ne.s32.totalorder %s3671_s21, %s3479_s18  ;;  %p3488_p2 = scmp.lt.s32.totalorder %s3479_s18, %s3479_s18 }
  0x33   : > { %p3482_p12 = pnand %p3480_p11, %p3440_p10  ;;  %p3489_p3 = por %p3488_p2, %p3487_p0 }
  0x35   : > { %p3483_p13 = pneg %p3482_p12 }
  0x37   : > { %p3490_p7 = pnand %p3489_p3, %p3483_p13 }
  0x39   : > { %3493 = shalt.err (!%p3490_p7)
}
  0x3a   : > { %s3568_s28 = smov 128   ;;  %s3569_s29 = smov 8  }
  0x3b   : > { %2987 = dma.hbm_to_vmem [thread:$0]  (!%p3667_p8), %s3893_s3, 8192, %s3671_s21, [#allocation9], %s3568_s28, %s3568_s28, %s3569_s29  }
  0x3c   : > { %s3721_s11 = sadd.s32 1, %s3562_s14   ;;  %s31_s20 = sadd.s32 1, %s3558_s13 }
  0x3d   : > { %s28_s17 = ssub.s32 %s3562_s14, %s3721_s11  ;;  %p38_p9 = scmp.ne.s32.totalorder %s3558_s13, %s3554_s12 }
  0x3e   : > { %p29_p10 = scmp.eq.s32.totalorder %s28_s17, 0  ;;  %p39_p1 = scmp.eq.s32.totalorder %s3562_s14, 0 }
  0x3f   : > { %p2994_p5 = scmp.lt.s32.totalorder %s3562_s14, 2  ;;  %s301_s23 = sand.u32 1, %s3558_s13  }
  0x40   : > { %s3730_s22 = scalar_select %p29_p10, %s3558_s13, %s31_s20  }
  0x41   : > { %p40_p4 = por %p39_p1, %p38_p9  ;;  %s2969_s24 = smul.u32 896, %s3562_s14 }
  0x42   : > { %s2968_s25 = smul.u32 56, %s301_s23  ;;  %s302_s14 = scalar_lea.sflag [#allocation7], %s301_s23 }
  0x43   : > { %p3735_p6 = pnand %p2994_p5, %p40_p4  ;;  %s3742_s27 = scalar_lea.hbm %s3890_s0, %s2969_s24 }
  0x44   : > { %s305_s18 = scalar_lea.vmem [#allocation6], %s2968_s25  ;;  %s3494_s29 = scalar_lea.hbm %s3742_s27, 896 }
  0x45   : > { %s313_s28 = sshll.u32 %s305_s18, 4  ;;  %p3495_p8 = scmp.ne.s32.totalorder %s3742_s27, %s3494_s29  ;;  %s3744_s28 = int_to_ptr.vmem [resolvable:$true] %s313_s28 }
  0x46   : > { %p3496_p11 = pneg %p3735_p6  ;;  %s3499_s17 = scalar_lea.hbm %s3890_s0, 1792 }
  0x47   : > { %p3500_p0 = scmp.lt.u32.totalorder %s3742_s27, %s3890_s0  ;;  %p3501_p2 = scmp.lt.u32.totalorder %s3499_s17, %s3494_s29 }
  0x48   : > { %p3497_p12 = pnand %p3496_p11, %p3495_p8  ;;  %p3503_p7 = scmp.lt.u32.totalorder %s3494_s29, %s3742_s27 }
  0x49   : > { %p3502_p3 = por %p3501_p2, %p3500_p0 }
  0x4a   : > { %p3498_p13 = pneg %p3497_p12 }
  0x4b   : > { %p3504_p10 = por %p3503_p7, %p3502_p3 }
  0x4d   : > { %p3505_p9 = pnand %p3504_p10, %p3498_p13 }
  0x4f   : > { %3508 = shalt.err (!%p3505_p9)
}
  0x50   : > { %s3509_s23 = scalar_lea.vmem %s3744_s28, 896  ;;  %s3570_s25 = smov [#allocation6]  }
  0x51   : > { %p3510_p1 = scmp.ne.s32.totalorder %s3744_s28, %s3509_s23  ;;  %s3514_s21 = sshll.u32 %s3570_s25, 4  ;;  %s3515_s21 = int_to_ptr.vmem [resolvable:$false] %s3514_s21 }
  0x52   : > { %s3516_s26 = scalar_lea.vmem %s3515_s21, 1792  ;;  %p3517_p8 = scmp.lt.s32.totalorder %s3744_s28, %s3515_s21 }
  0x53   : > { %p3512_p4 = pnand %p3510_p1, %p3496_p11  ;;  %p3518_p12 = scmp.lt.s32.totalorder %s3516_s26, %s3509_s23 }
  0x55   : > { %p3513_p5 = pneg %p3512_p4  ;;  %p3519_p0 = por %p3518_p12, %p3517_p8 }
  0x57   : > { %p3520_p2 = pnand %p3519_p0, %p3513_p5 }
  0x59   : > { %3523 = shalt.err (!%p3520_p2)
}
  0x5a   : > { %2991 = dma.hbm_to_vmem [thread:$0]  (!%p3735_p6), %s3742_s27, 896, %s3744_s28, %s302_s14  }
  0x5b   : > { %p3907_p13 = scmp.ne.s32.totalorder %s3904_s16, 0 }
  0x5c   : > { %s324_s18 = sand.u32 (!%p3907_p13), 1, %s3554_s12   ;;  %p3908_p11 = scmp.ne.s32.totalorder (!%p3907_p13), %s3903_s15, 0 }
  0x5d   : > { %322 = sbr.rel (%p3907_p13) target bundleno = 1061 (0x425), region = 56  ;;  %s325_s30 = scalar_lea.sflag (!%p3907_p13), [#allocation7], %s324_s18 }
  0x5e   : > { %s2970_s29 = smul.u32 (!%p3907_p13), 56, %s324_s18 }
  0x60   : > { %s3774_s10 = scalar_lea.vmem (!%p3907_p13), [#allocation6], %s2970_s29 }
  0x64   : > { %3541 = dma.done.wait (%p3908_p11), %s325_s30, 896  }
  0x65   : > { %3543 = vsyncadd (%p3908_p11), %s325_s30, 4294966400  ;;  %p3909_p3 = scmp.eq.s32.totalorder %s3646_s8, 0 }
  0x67   : > { %3545 = dma.done.wait (%p3909_p3), [#allocation9], 33280   ;;  %p3910_p6 = pmov %p3909_p3 }
  0x68   : > { %p3911_p7 = scmp.ne.s32.totalorder %s3646_s8, 0 }
  0x69   : > { %3547 = vsyncadd (%p3910_p6), [#allocation9], 4294934016  ;;  %v371_v0 = vlaneseq (!%p3911_p7)  ;;  %v3571_v1 = vmov (!%p3911_p7), 0.0  }
  0x6a   : > { %370 = sbr.rel (%p3911_p7) target bundleno = 113 (0x71), region = 72 }
  0x6b   : > { %vm373_vm0 = vcmp.lt.s32.totalorder (!%p3911_p7), %v371_v0, 256 }
  0x6c   : > { %375 = vst.msk [vmem:[#allocation3] sm:$0x3] (!%p3911_p7), %vm373_vm0, %v3571_v1  ;;  %376 = vst.msk [vmem:[#allocation4] sm:$0x3] (!%p3911_p7), %vm373_vm0, %v3571_v1 }
  0x71 PF: > { %v3038_v2 = vld [vmem:[#allocation8 + $0x4] ss:$16 sps:$4 sm:$0xff]   ;;  %v3042_v4 = vld [vmem:[#allocation8] ss:$16 sps:$4 sm:$0xff]   ;;  %vm1589_vm1 = vcmask 130048   ;;  %s2935_s28 = sshll.u32 %s3646_s8, 4 }
  0x72   : > { %v3040_v3 = vld [vmem:[#allocation8 + $0x204] ss:$16 sps:$4 sm:$0xff]   ;;  %1593 = vmatprep.subr.bf16.mxu1 %v3038_v2  ;;  %v3043_v5 = vld [vmem:[#allocation8 + $0x200] ss:$16 sps:$4 sm:$0xff]   ;;  %s2417_s14 = scalar_lea.vmem [#allocation2], %s2935_s28  ;;  %p2932_p10 = scmp.ne.s32.totalorder %s3646_s8, 1 }
  0x73   : > { %1634 = vmatprep.subr.bf16.mxu0 %v3040_v3  ;;  %v3044_v6 = vld [vmem:[#allocation8 + $0x24] ss:$16 sps:$4 sm:$0xff]   ;;  %1594 = vmatpush1.bf16.msra.mxu1 %v3042_v4  ;;  %v3048_v8 = vld [vmem:[#allocation8 + $0x20] ss:$16 sps:$4 sm:$0xff]   ;;  %s2511_s21 = sld [smem:[#allocation5]] (!%p2932_p10)  ;;  %vm2570_vm11 = vcmask (!%p2932_p10), 7168  }
  0x74   : > { %1635 = vmatpush1.bf16.msra.mxu0 %v3043_v5  ;;  %v3046_v7 = vld [vmem:[#allocation8 + $0x224] ss:$16 sps:$4 sm:$0xff]   ;;  %1595 = vmatprep.subr.bf16.mxu1 %v3044_v6  ;;  %v3049_v9 = vld [vmem:[#allocation8 + $0x220] ss:$16 sps:$4 sm:$0xff]  }
  0x75   : > { %1636 = vmatprep.subr.bf16.mxu0 %v3046_v7  ;;  %v3050_v10 = vld [vmem:[#allocation8 + $0x44] ss:$16 sps:$4 sm:$0xff]   ;;  %v3054_v12 = vld [vmem:[#allocation8 + $0x40] ss:$16 sps:$4 sm:$0xff]  }
  0x76   : > { %v3052_v11 = vld [vmem:[#allocation8 + $0x244] ss:$16 sps:$4 sm:$0xff]   ;;  %v3055_v13 = vld [vmem:[#allocation8 + $0x240] ss:$16 sps:$4 sm:$0xff]  }
  0x77   : > { %1596 = vmatpush1.bf16.msra.mxu1 %v3048_v8  ;;  %v3056_v14 = vld [vmem:[#allocation8 + $0x64] ss:$16 sps:$4 sm:$0xff]   ;;  %v3060_v16 = vld [vmem:[#allocation8 + $0x60] ss:$16 sps:$4 sm:$0xff]  }
  0x78   : > { %1637 = vmatpush1.bf16.msra.mxu0 %v3049_v9  ;;  %1597 = vmatprep.subr.bf16.mxu1 %v3050_v10  ;;  %v3058_v15 = vld [vmem:[#allocation8 + $0x264] ss:$16 sps:$4 sm:$0xff]   ;;  %v3061_v17 = vld [vmem:[#allocation8 + $0x260] ss:$16 sps:$4 sm:$0xff]   ;;  %v3139_v9 = vld [vmem:[#allocation8 + $0xc] ss:$16 sps:$4 sm:$0xff]  }
  0x79   : > { %1638 = vmatprep.subr.bf16.mxu0 %v3052_v11  ;;  %v3062_v18 = vld [vmem:[#allocation8 + $0x84] ss:$16 sps:$4 sm:$0xff]   ;;  %v3066_v20 = vld [vmem:[#allocation8 + $0x80] ss:$16 sps:$4 sm:$0xff]  }
  0x7a   : > { %v3064_v19 = vld [vmem:[#allocation8 + $0x284] ss:$16 sps:$4 sm:$0xff]   ;;  %v3067_v21 = vld [vmem:[#allocation8 + $0x280] ss:$16 sps:$4 sm:$0xff]  }
  0x7b   : > { %1598 = vmatpush1.bf16.msra.mxu1 %v3054_v12  ;;  %v3068_v22 = vld [vmem:[#allocation8 + $0xa4] ss:$16 sps:$4 sm:$0xff]   ;;  %v3072_v24 = vld [vmem:[#allocation8 + $0xa0] ss:$16 sps:$4 sm:$0xff]   ;;  %v3137_v12 = vld [vmem:[#allocation8 + $0x8] ss:$16 sps:$4 sm:$0xff]  }
  0x7c   : > { %1639 = vmatpush1.bf16.msra.mxu0 %v3055_v13  ;;  %1599 = vmatprep.subr.bf16.mxu1 %v3056_v14  ;;  %v3070_v23 = vld [vmem:[#allocation8 + $0x2a4] ss:$16 sps:$4 sm:$0xff]   ;;  %v3073_v25 = vld [vmem:[#allocation8 + $0x2a0] ss:$16 sps:$4 sm:$0xff]  }
  0x7d   : > { %1640 = vmatprep.subr.bf16.mxu0 %v3058_v15  ;;  %v3074_v26 = vld [vmem:[#allocation8 + $0xc4] ss:$16 sps:$4 sm:$0xff]   ;;  %v3078_v28 = vld [vmem:[#allocation8 + $0xc0] ss:$16 sps:$4 sm:$0xff]   ;;  %v3145_v15 = vld [vmem:[#allocation8 + $0x2c] ss:$16 sps:$4 sm:$0xff]  }
  0x7e   : > { %v3076_v27 = vld [vmem:[#allocation8 + $0x2c4] ss:$16 sps:$4 sm:$0xff]   ;;  %v3079_v29 = vld [vmem:[#allocation8 + $0x2c0] ss:$16 sps:$4 sm:$0xff]  }
  0x7f   : > { %1600 = vmatpush1.bf16.msra.mxu1 %v3060_v16  ;;  %v3080_v30 = vld [vmem:[#allocation8 + $0xe4] ss:$16 sps:$4 sm:$0xff]   ;;  %v3084_v32 = vld [vmem:[#allocation8 + $0xe0] ss:$16 sps:$4 sm:$0xff]  }
  0x80   : > { %1641 = vmatpush1.bf16.msra.mxu0 %v3061_v17  ;;  %1601 = vmatprep.subr.bf16.mxu1 %v3062_v18  ;;  %v3082_v31 = vld [vmem:[#allocation8 + $0x2e4] ss:$16 sps:$4 sm:$0xff]   ;;  %v3085_v33 = vld [vmem:[#allocation8 + $0x2e0] ss:$16 sps:$4 sm:$0xff]   ;;  %v3143_v17 = vld [vmem:[#allocation8 + $0x28] ss:$16 sps:$4 sm:$0xff]  }
  0x81   : > { %1642 = vmatprep.subr.bf16.mxu0 %v3064_v19  ;;  %v3086_v34 = vld [vmem:[#allocation8 + $0x104] ss:$16 sps:$4 sm:$0xff]   ;;  %v3090_v36 = vld [vmem:[#allocation8 + $0x100] ss:$16 sps:$4 sm:$0xff]   ;;  %v3151_v19 = vld [vmem:[#allocation8 + $0x4c] ss:$16 sps:$4 sm:$0xff]  }
  0x82   : > { %v3088_v35 = vld [vmem:[#allocation8 + $0x304] ss:$16 sps:$4 sm:$0xff]   ;;  %v3091_v37 = vld [vmem:[#allocation8 + $0x300] ss:$16 sps:$4 sm:$0xff]  }
  0x83   : > { %1602 = vmatpush1.bf16.msra.mxu1 %v3066_v20  ;;  %v3092_v38 = vld [vmem:[#allocation8 + $0x124] ss:$16 sps:$4 sm:$0xff]   ;;  %v3096_v40 = vld [vmem:[#allocation8 + $0x120] ss:$16 sps:$4 sm:$0xff]  }
  0x84   : > { %1643 = vmatpush1.bf16.msra.mxu0 %v3067_v21  ;;  %1603 = vmatprep.subr.bf16.mxu1 %v3068_v22  ;;  %v3094_v39 = vld [vmem:[#allocation8 + $0x324] ss:$16 sps:$4 sm:$0xff]   ;;  %v3097_v41 = vld [vmem:[#allocation8 + $0x320] ss:$16 sps:$4 sm:$0xff]   ;;  %v3149_v21 = vld [vmem:[#allocation8 + $0x48] ss:$16 sps:$4 sm:$0xff]  }
  0x85   : > { %1644 = vmatprep.subr.bf16.mxu0 %v3070_v23  ;;  %v3098_v42 = vld [vmem:[#allocation8 + $0x144] ss:$16 sps:$4 sm:$0xff]   ;;  %v3102_v44 = vld [vmem:[#allocation8 + $0x140] ss:$16 sps:$4 sm:$0xff]   ;;  %v3157_v23 = vld [vmem:[#allocation8 + $0x6c] ss:$16 sps:$4 sm:$0xff]  }
  0x86   : > { %v3100_v43 = vld [vmem:[#allocation8 + $0x344] ss:$16 sps:$4 sm:$0xff]   ;;  %v3103_v45 = vld [vmem:[#allocation8 + $0x340] ss:$16 sps:$4 sm:$0xff]  }
  0x87   : > { %1604 = vmatpush1.bf16.msra.mxu1 %v3072_v24  ;;  %v3104_v46 = vld [vmem:[#allocation8 + $0x164] ss:$16 sps:$4 sm:$0xff]   ;;  %v3108_v49 = vld [vmem:[#allocation8 + $0x160] ss:$16 sps:$4 sm:$0xff]  }
  0x88   : > { %1645 = vmatpush1.bf16.msra.mxu0 %v3073_v25  ;;  %1605 = vmatprep.subr.bf16.mxu1 %v3074_v26  ;;  %v3106_v47 = vld [vmem:[#allocation8 + $0x364] ss:$16 sps:$4 sm:$0xff]   ;;  %v3109_v52 = vld [vmem:[#allocation8 + $0x360] ss:$16 sps:$4 sm:$0xff]   ;;  %v3155_v25 = vld [vmem:[#allocation8 + $0x68] ss:$16 sps:$4 sm:$0xff]  }
  0x89   : > { %1646 = vmatprep.subr.bf16.mxu0 %v3076_v27  ;;  %v378_v48 = vld [vmem:[%s3774_s10 + $0x8] sm:$0xff]  ;;  %v380_v51 = vld [vmem:[%s3774_s10 + $0x18] sm:$0xff]  ;;  %v377_v6 = vld [vmem:[%s3774_s10] sm:$0xff] }
  0x8a   : > { %v3787_v50 = vpack.c.bf16 %v378_v48, %v378_v48  ;;  %v3110_v53 = vld [vmem:[#allocation8 + $0x184] ss:$16 sps:$4 sm:$0xff]   ;;  %v3790_v54 = vpack.c.bf16 %v380_v51, %v380_v51  ;;  %v3114_v56 = vld [vmem:[#allocation8 + $0x180] ss:$16 sps:$4 sm:$0xff]   ;;  %v3796_v10 = vpack.c.bf16 %v377_v6, %v377_v6  ;;  %v3163_v27 = vld [vmem:[#allocation8 + $0x8c] ss:$16 sps:$4 sm:$0xff]  }
  0x8b   : > { %1606 = vmatpush1.bf16.msra.mxu1 %v3078_v28  ;;  %v3112_v55 = vld [vmem:[#allocation8 + $0x384] ss:$16 sps:$4 sm:$0xff]   ;;  %v3115_v57 = vld [vmem:[#allocation8 + $0x380] ss:$16 sps:$4 sm:$0xff]   ;;  %v3191_v51 = vld [vmem:[#allocation8 + $0x128] ss:$16 sps:$4 sm:$0xff]  }
  0x8c   : > { %1647 = vmatpush1.bf16.msra.mxu0 %v3079_v29  ;;  %1607 = vmatprep.subr.bf16.mxu1 %v3080_v30  ;;  %v3116_v58 = vld [vmem:[#allocation8 + $0x1a4] ss:$16 sps:$4 sm:$0xff]   ;;  %v3120_v60 = vld [vmem:[#allocation8 + $0x1a0] ss:$16 sps:$4 sm:$0xff]   ;;  %v3161_v29 = vld [vmem:[#allocation8 + $0x88] ss:$16 sps:$4 sm:$0xff]  }
  0x8d   : > { %1648 = vmatprep.subr.bf16.mxu0 %v3082_v31  ;;  %1625 = vmatprep.mubr.bf16.mxu1 %v3787_v50  ;;  %v3118_v59 = vld [vmem:[#allocation8 + $0x3a4] ss:$16 sps:$4 sm:$0xff]   ;;  %v3121_v61 = vld [vmem:[#allocation8 + $0x3a0] ss:$16 sps:$4 sm:$0xff]   ;;  %v3169_v31 = vld [vmem:[#allocation8 + $0xac] ss:$16 sps:$4 sm:$0xff]  }
  0x8e   : > { %1666 = vmatprep.mubr.bf16.mxu0 %v3790_v54  ;;  %v3122_v62 = vld [vmem:[#allocation8 + $0x1c4] ss:$16 sps:$4 sm:$0xff]   ;;  %v3126_v0 = vld [vmem:[#allocation8 + $0x1c0] ss:$16 sps:$4 sm:$0xff]   ;;  %v3223_v6 = vld [vmem:[#allocation8 + $0x1cc] ss:$16 sps:$4 sm:$0xff]  }
  0x8f   : > { %1608 = vmatpush1.bf16.msra.mxu1 %v3084_v32  ;;  %v3124_v63 = vld [vmem:[#allocation8 + $0x3c4] ss:$16 sps:$4 sm:$0xff]   ;;  %v3127_v1 = vld [vmem:[#allocation8 + $0x3c0] ss:$16 sps:$4 sm:$0xff]  }
  0x90   : > { %1649 = vmatpush1.bf16.msra.mxu0 %v3085_v33  ;;  %1609 = vmatprep.subr.bf16.mxu1 %v3086_v34  ;;  %v3128_v2 = vld [vmem:[#allocation8 + $0x1e4] ss:$16 sps:$4 sm:$0xff]   ;;  %v3132_v4 = vld [vmem:[#allocation8 + $0x1e0] ss:$16 sps:$4 sm:$0xff]   ;;  %v3167_v33 = vld [vmem:[#allocation8 + $0xa8] ss:$16 sps:$4 sm:$0xff]  }
  0x91   : > { %1650 = vmatprep.subr.bf16.mxu0 %v3088_v35  ;;  %v3130_v3 = vld [vmem:[#allocation8 + $0x3e4] ss:$16 sps:$4 sm:$0xff]   ;;  %v3133_v5 = vld [vmem:[#allocation8 + $0x3e0] ss:$16 sps:$4 sm:$0xff]   ;;  %v3175_v35 = vld [vmem:[#allocation8 + $0xcc] ss:$16 sps:$4 sm:$0xff]  }
  0x92   : > { %v3136_v7 = vld [vmem:[#allocation8 + $0x404] ss:$16 sps:$4 sm:$0xff]   ;;  %v3134_v11 = vld [vmem:[#allocation8 + $0x400] ss:$16 sps:$4 sm:$0xff]  }
  0x93   : > { %1610 = vmatpush1.bf16.msra.mxu1 %v3090_v36  ;;  %v379_v8 = vld [vmem:[%s3774_s10 + $0x10] sm:$0xff]  ;;  %v382_v36 = vld [vmem:[%s3774_s10 + $0x28] sm:$0xff] }
  0x94   : > { %1651 = vmatpush1.bf16.msra.mxu0 %v3091_v37  ;;  %1611 = vmatprep.subr.bf16.mxu1 %v3092_v38  ;;  %v3798_v13 = vpack.c.bf16 %v379_v8, %v379_v8  ;;  %v3142_v14 = vld [vmem:[#allocation8 + $0x424] ss:$16 sps:$4 sm:$0xff]   ;;  %v3140_v16 = vld [vmem:[#allocation8 + $0x420] ss:$16 sps:$4 sm:$0xff]   ;;  %v3804_v37 = vpack.c.bf16 %v382_v36, %v382_v36  ;;  %v3221_v8 = vld [vmem:[#allocation8 + $0x1c8] ss:$16 sps:$4 sm:$0xff]  }
  0x95   : > { %1652 = vmatprep.subr.bf16.mxu0 %v3094_v39  ;;  %v3148_v18 = vld [vmem:[#allocation8 + $0x444] ss:$16 sps:$4 sm:$0xff]   ;;  %v3146_v20 = vld [vmem:[#allocation8 + $0x440] ss:$16 sps:$4 sm:$0xff]   ;;  %v3173_v39 = vld [vmem:[#allocation8 + $0xc8] ss:$16 sps:$4 sm:$0xff]  }
  0x96   : > { %v3154_v22 = vld [vmem:[#allocation8 + $0x464] ss:$16 sps:$4 sm:$0xff]   ;;  %v3152_v24 = vld [vmem:[#allocation8 + $0x460] ss:$16 sps:$4 sm:$0xff]  }
  0x97   : > { %1612 = vmatpush1.bf16.msra.mxu1 %v3096_v40  ;;  %v3160_v26 = vld [vmem:[#allocation8 + $0x484] ss:$16 sps:$4 sm:$0xff]   ;;  %v3158_v28 = vld [vmem:[#allocation8 + $0x480] ss:$16 sps:$4 sm:$0xff]  }
  0x98   : > { %1653 = vmatpush1.bf16.msra.mxu0 %v3097_v41  ;;  %1613 = vmatprep.subr.bf16.mxu1 %v3098_v42  ;;  %v3166_v30 = vld [vmem:[#allocation8 + $0x4a4] ss:$16 sps:$4 sm:$0xff]   ;;  %v3164_v32 = vld [vmem:[#allocation8 + $0x4a0] ss:$16 sps:$4 sm:$0xff]   ;;  %v3181_v41 = vld [vmem:[#allocation8 + $0xec] ss:$16 sps:$4 sm:$0xff]  }
  0x99   : > { %1654 = vmatprep.subr.bf16.mxu0 %v3100_v43  ;;  %v3172_v34 = vld [vmem:[#allocation8 + $0x4c4] ss:$16 sps:$4 sm:$0xff]   ;;  %v3170_v38 = vld [vmem:[#allocation8 + $0x4c0] ss:$16 sps:$4 sm:$0xff]   ;;  %v3179_v43 = vld [vmem:[#allocation8 + $0xe8] ss:$16 sps:$4 sm:$0xff]  }
  0x9a   : > { %v3178_v40 = vld [vmem:[#allocation8 + $0x4e4] ss:$16 sps:$4 sm:$0xff]   ;;  %v3176_v42 = vld [vmem:[#allocation8 + $0x4e0] ss:$16 sps:$4 sm:$0xff]  }
  0x9b   : > { %1614 = vmatpush1.bf16.msra.mxu1 %v3102_v44  ;;  %v3184_v44 = vld [vmem:[#allocation8 + $0x504] ss:$16 sps:$4 sm:$0xff]  }
  0x9c   : > { %1655 = vmatpush1.bf16.msra.mxu0 %v3103_v45  ;;  %1615 = vmatprep.subr.bf16.mxu1 %v3104_v46  ;;  %v3187_v45 = vld [vmem:[#allocation8 + $0x10c] ss:$16 sps:$4 sm:$0xff]   ;;  %v3182_v46 = vld [vmem:[#allocation8 + $0x500] ss:$16 sps:$4 sm:$0xff]   ;;  %v3190_v48 = vld [vmem:[#allocation8 + $0x524] ss:$16 sps:$4 sm:$0xff]  }
  0x9d   : > { %1656 = vmatprep.subr.bf16.mxu0 %v3106_v47  ;;  %v3185_v47 = vld [vmem:[#allocation8 + $0x108] ss:$16 sps:$4 sm:$0xff]   ;;  %v3334_v36 = vld [vmem:[#allocation10 + $0x4] ss:$8 sps:$4 sm:$0xff]  }
  0x9f   : > { %1616 = vmatpush1.bf16.msra.mxu1 %v3108_v49  ;;  %v3193_v49 = vld [vmem:[#allocation8 + $0x12c] ss:$16 sps:$4 sm:$0xff]  }
  0xa0   : > { %1657 = vmatpush1.bf16.msra.mxu0 %v3109_v52  ;;  %1617 = vmatprep.subr.bf16.mxu1 %v3110_v53  ;;  %v3196_v52 = vld [vmem:[#allocation8 + $0x544] ss:$16 sps:$4 sm:$0xff]   ;;  %v3199_v53 = vld [vmem:[#allocation8 + $0x14c] ss:$16 sps:$4 sm:$0xff]  }
  0xa1   : > { %1658 = vmatprep.subr.bf16.mxu0 %v3112_v55  ;;  %v3194_v55 = vld [vmem:[#allocation8 + $0x540] ss:$16 sps:$4 sm:$0xff]  }
  0xa3   : > { %1618 = vmatpush1.bf16.msra.mxu1 %v3114_v56  ;;  %v3197_v56 = vld [vmem:[#allocation8 + $0x148] ss:$16 sps:$4 sm:$0xff]  }
  0xa4   : > { %1659 = vmatpush1.bf16.msra.mxu0 %v3115_v57  ;;  %1619 = vmatprep.subr.bf16.mxu1 %v3116_v58  ;;  %v3202_v57 = vld [vmem:[#allocation8 + $0x564] ss:$16 sps:$4 sm:$0xff]   ;;  %v3205_v58 = vld [vmem:[#allocation8 + $0x16c] ss:$16 sps:$4 sm:$0xff]  }
  0xa5   : > { %1660 = vmatprep.subr.bf16.mxu0 %v3118_v59  ;;  %v3200_v59 = vld [vmem:[#allocation8 + $0x560] ss:$16 sps:$4 sm:$0xff]  }
  0xa7   : > { %1620 = vmatpush1.bf16.msra.mxu1 %v3120_v60  ;;  %v3203_v60 = vld [vmem:[#allocation8 + $0x168] ss:$16 sps:$4 sm:$0xff]  }
  0xa8   : > { %1661 = vmatpush1.bf16.msra.mxu0 %v3121_v61  ;;  %1621 = vmatprep.subr.bf16.mxu1 %v3122_v62  ;;  %v3208_v61 = vld [vmem:[#allocation8 + $0x584] ss:$16 sps:$4 sm:$0xff]   ;;  %v3211_v62 = vld [vmem:[#allocation8 + $0x18c] ss:$16 sps:$4 sm:$0xff]  }
  0xa9   : > { %1662 = vmatprep.subr.bf16.mxu0 %v3124_v63  ;;  %v3206_v63 = vld [vmem:[#allocation8 + $0x580] ss:$16 sps:$4 sm:$0xff]  }
  0xab   : > { %1622 = vmatpush1.bf16.msra.mxu1 %v3126_v0  ;;  %v3209_v0 = vld [vmem:[#allocation8 + $0x188] ss:$16 sps:$4 sm:$0xff]  }
  0xac   : > { %1663 = vmatpush1.bf16.msra.mxu0 %v3127_v1  ;;  %1623 = vmatprep.subr.bf16.mxu1 %v3128_v2  ;;  %v3214_v1 = vld [vmem:[#allocation8 + $0x5a4] ss:$16 sps:$4 sm:$0xff]   ;;  %v3217_v2 = vld [vmem:[#allocation8 + $0x1ac] ss:$16 sps:$4 sm:$0xff]  }
  0xad   : > { %1664 = vmatprep.subr.bf16.mxu0 %v3130_v3  ;;  %v3212_v3 = vld [vmem:[#allocation8 + $0x5a0] ss:$16 sps:$4 sm:$0xff]  }
  0xaf   : > { %1624 = vmatpush1.bf16.msra.mxu1 %v3132_v4  ;;  %v3215_v4 = vld [vmem:[#allocation8 + $0x1a8] ss:$16 sps:$4 sm:$0xff]  }
  0xb0   : > { %1665 = vmatpush1.bf16.msra.mxu0 %v3133_v5  ;;  %1757 = vmatprep.subr.bf16.mxu1 %v3139_v9  ;;  %v3220_v5 = vld [vmem:[#allocation8 + $0x5c4] ss:$16 sps:$4 sm:$0xff]  }
  0xb1   : > { %1675 = vmatprep.subr.bf16.mxu0 %v3136_v7  ;;  %v3218_v7 = vld [vmem:[#allocation8 + $0x5c0] ss:$16 sps:$4 sm:$0xff]   ;;  %v3226_v9 = vld [vmem:[#allocation8 + $0x5e4] ss:$16 sps:$4 sm:$0xff]  }
  0xb2   : > { %1626 = vmatmul.mubr.bf16.vlgmr.msra.gmra.mrb[0].mxu1 %v3796_v10 }
  0xb3   : > { %1667 = vmatmul.mubr.bf16.vlgmr.msra.gmra.mrb[0].mxu0 %v3798_v13  ;;  %1758 = vmatpush1.bf16.msra.mxu1 %v3137_v12  ;;  %v3224_v12 = vld [vmem:[#allocation8 + $0x5e0] ss:$16 sps:$4 sm:$0xff]  }
  0xb4   : > { %1676 = vmatpush1.bf16.msra.mxu0 %v3134_v11  ;;  %1759 = vmatprep.subr.bf16.mxu1 %v3145_v15  ;;  %v3229_v11 = vld [vmem:[#allocation8 + $0x1ec] ss:$16 sps:$4 sm:$0xff]  }
  0xb5   : > { %1677 = vmatprep.subr.bf16.mxu0 %v3142_v14  ;;  %1789 = vmatprep.mubr.bf16.mxu1 %v3787_v50  ;;  %v3188_v50 = vld [vmem:[#allocation8 + $0x520] ss:$16 sps:$4 sm:$0xff]   ;;  %v3227_v14 = vld [vmem:[#allocation8 + $0x1e8] ss:$16 sps:$4 sm:$0xff]  }
  0xb6   : > { %1707 = vmatprep.mubr.bf16.mxu0 %v3804_v37  ;;  %v381_v15 = vld [vmem:[%s3774_s10 + $0x20] sm:$0xff] }
  0xb7   : > { %1760 = vmatpush1.bf16.msra.mxu1 %v3143_v17  ;;  %v3238_v17 = vld [vmem:[#allocation8 + $0x604] ss:$16 sps:$4 sm:$0xff]  }
  0xb8   : > { %1678 = vmatpush1.bf16.msra.mxu0 %v3140_v16  ;;  %1761 = vmatprep.subr.bf16.mxu1 %v3151_v19  ;;  %v3232_v16 = vld [vmem:[#allocation8 + $0x20c] ss:$16 sps:$4 sm:$0xff]   ;;  %v3230_v19 = vld [vmem:[#allocation8 + $0x208] ss:$16 sps:$4 sm:$0xff]  }
  0xb9   : > { %1679 = vmatprep.subr.bf16.mxu0 %v3148_v18  ;;  %v3808_v18 = vpack.c.bf16 %v381_v15, %v381_v15  ;;  %v3286_v15 = vld [vmem:[#allocation8 + $0x42c] ss:$16 sps:$4 sm:$0xff]  }
  0xbb   : > { %1762 = vmatpush1.bf16.msra.mxu1 %v3149_v21  ;;  %v3235_v21 = vld [vmem:[#allocation8 + $0x22c] ss:$16 sps:$4 sm:$0xff]  }
  0xbc   : > { %1680 = vmatpush1.bf16.msra.mxu0 %v3146_v20  ;;  %1763 = vmatprep.subr.bf16.mxu1 %v3157_v23  ;;  %v3236_v20 = vld [vmem:[#allocation8 + $0x600] ss:$16 sps:$4 sm:$0xff]   ;;  %v3241_v23 = vld [vmem:[#allocation8 + $0x24c] ss:$16 sps:$4 sm:$0xff]  }
  0xbd   : > { %1681 = vmatprep.subr.bf16.mxu0 %v3154_v22  ;;  %v3233_v22 = vld [vmem:[#allocation8 + $0x228] ss:$16 sps:$4 sm:$0xff]  }
  0xbf   : > { %1764 = vmatpush1.bf16.msra.mxu1 %v3155_v25  ;;  %v3239_v25 = vld [vmem:[#allocation8 + $0x248] ss:$16 sps:$4 sm:$0xff]  }
  0xc0   : > { %1682 = vmatpush1.bf16.msra.mxu0 %v3152_v24  ;;  %1765 = vmatprep.subr.bf16.mxu1 %v3163_v27  ;;  %v3572_v24 = vmov 0   ;;  %v3244_v27 = vld [vmem:[#allocation8 + $0x26c] ss:$16 sps:$4 sm:$0xff]  }
  0xc1   : > { %1683 = vmatprep.subr.bf16.mxu0 %v3160_v26  ;;  %v383_v26 = vld [vmem:[%s3774_s10 + $0x30] sm:$0xff] }
  0xc3   : > { %1766 = vmatpush1.bf16.msra.mxu1 %v3161_v29  ;;  %v3815_v29 = vpack.c.bf16 %v383_v26, %v383_v26  ;;  %v3368_v26 = vld [vmem:[#allocation10 + $0xc0] ss:$8 sps:$4 sm:$0xff]  }
  0xc4   : > { %1684 = vmatpush1.bf16.msra.mxu0 %v3158_v28  ;;  %1767 = vmatprep.subr.bf16.mxu1 %v3169_v31  ;;  %v3242_v28 = vld [vmem:[#allocation8 + $0x268] ss:$16 sps:$4 sm:$0xff]   ;;  %v3250_v31 = vld [vmem:[#allocation8 + $0x2ac] ss:$16 sps:$4 sm:$0xff]  }
  0xc5   : > { %1685 = vmatprep.subr.bf16.mxu0 %v3166_v30  ;;  %v3247_v30 = vld [vmem:[#allocation8 + $0x28c] ss:$16 sps:$4 sm:$0xff]  }
  0xc7   : > { %1768 = vmatpush1.bf16.msra.mxu1 %v3167_v33  ;;  %v3253_v33 = vld [vmem:[#allocation8 + $0x2cc] ss:$16 sps:$4 sm:$0xff]  }
  0xc8   : > { %1686 = vmatpush1.bf16.msra.mxu0 %v3164_v32  ;;  %1769 = vmatprep.subr.bf16.mxu1 %v3175_v35  ;;  %v3248_v32 = vld [vmem:[#allocation8 + $0x2a8] ss:$16 sps:$4 sm:$0xff]  }
  0xc9   : > { %1687 = vmatprep.subr.bf16.mxu0 %v3172_v34  ;;  %v3256_v34 = vld [vmem:[#allocation8 + $0x2ec] ss:$16 sps:$4 sm:$0xff]   ;;  %v3332_v35 = vld [vmem:[#allocation10] ss:$8 sps:$4 sm:$0xff]  }
  0xcb   : > { %1770 = vmatpush1.bf16.msra.mxu1 %v3173_v39  ;;  %v3254_v39 = vld [vmem:[#allocation8 + $0x2e8] ss:$16 sps:$4 sm:$0xff]  }
  0xcc   : > { %1688 = vmatpush1.bf16.msra.mxu0 %v3170_v38  ;;  %1771 = vmatprep.subr.bf16.mxu1 %v3181_v41  ;;  %v3337_v38 = vld [vmem:[#allocation10 + $0x14] ss:$8 sps:$4 sm:$0xff]  }
  0xcd   : > { %1689 = vmatprep.subr.bf16.mxu0 %v3178_v40  ;;  %v3335_v40 = vld [vmem:[#allocation10 + $0x10] ss:$8 sps:$4 sm:$0xff]   ;;  %v3259_v41 = vld [vmem:[#allocation8 + $0x30c] ss:$16 sps:$4 sm:$0xff]  }
  0xcf   : > { %1772 = vmatpush1.bf16.msra.mxu1 %v3179_v43  ;;  %v3257_v43 = vld [vmem:[#allocation8 + $0x308] ss:$16 sps:$4 sm:$0xff]  }
  0xd0   : > { %1690 = vmatpush1.bf16.msra.mxu0 %v3176_v42  ;;  %1773 = vmatprep.subr.bf16.mxu1 %v3187_v45  ;;  %v3340_v42 = vld [vmem:[#allocation10 + $0x24] ss:$8 sps:$4 sm:$0xff]  }
  0xd1   : > { %1691 = vmatprep.subr.bf16.mxu0 %v3184_v44  ;;  %v3338_v44 = vld [vmem:[#allocation10 + $0x20] ss:$8 sps:$4 sm:$0xff]   ;;  %v3262_v45 = vld [vmem:[#allocation8 + $0x32c] ss:$16 sps:$4 sm:$0xff]  }
  0xd3   : > { %1774 = vmatpush1.bf16.msra.mxu1 %v3185_v47  ;;  %v3260_v47 = vld [vmem:[#allocation8 + $0x328] ss:$16 sps:$4 sm:$0xff]  }
  0xd4   : > { %1692 = vmatpush1.bf16.msra.mxu0 %v3182_v46  ;;  %1775 = vmatprep.subr.bf16.mxu1 %v3193_v49  ;;  %v3343_v46 = vld [vmem:[#allocation10 + $0x34] ss:$8 sps:$4 sm:$0xff]  }
  0xd5   : > { %1693 = vmatprep.subr.bf16.mxu0 %v3190_v48  ;;  %v3341_v48 = vld [vmem:[#allocation10 + $0x30] ss:$8 sps:$4 sm:$0xff]   ;;  %v3265_v49 = vld [vmem:[#allocation8 + $0x34c] ss:$16 sps:$4 sm:$0xff]  }
  0xd7   : > { %1776 = vmatpush1.bf16.msra.mxu1 %v3191_v51  ;;  %v3263_v51 = vld [vmem:[#allocation8 + $0x348] ss:$16 sps:$4 sm:$0xff]  }
  0xd8   : > { %1694 = vmatpush1.bf16.msra.mxu0 %v3188_v50  ;;  %1777 = vmatprep.subr.bf16.mxu1 %v3199_v53  ;;  %v3346_v50 = vld [vmem:[#allocation10 + $0x44] ss:$8 sps:$4 sm:$0xff]  }
  0xd9   : > { %1695 = vmatprep.subr.bf16.mxu0 %v3196_v52  ;;  %v3344_v52 = vld [vmem:[#allocation10 + $0x40] ss:$8 sps:$4 sm:$0xff]   ;;  %v3268_v53 = vld [vmem:[#allocation8 + $0x36c] ss:$16 sps:$4 sm:$0xff]  }
  0xdb   : > { %1778 = vmatpush1.bf16.msra.mxu1 %v3197_v56  ;;  %v3266_v56 = vld [vmem:[#allocation8 + $0x368] ss:$16 sps:$4 sm:$0xff]  }
  0xdc   : > { %1696 = vmatpush1.bf16.msra.mxu0 %v3194_v55  ;;  %1779 = vmatprep.subr.bf16.mxu1 %v3205_v58  ;;  %v3349_v55 = vld [vmem:[#allocation10 + $0x54] ss:$8 sps:$4 sm:$0xff]  }
  0xdd   : > { %1697 = vmatprep.subr.bf16.mxu0 %v3202_v57  ;;  %v3347_v57 = vld [vmem:[#allocation10 + $0x50] ss:$8 sps:$4 sm:$0xff]   ;;  %v3271_v58 = vld [vmem:[#allocation8 + $0x38c] ss:$16 sps:$4 sm:$0xff]  }
  0xdf   : > { %1780 = vmatpush1.bf16.msra.mxu1 %v3203_v60  ;;  %v3269_v60 = vld [vmem:[#allocation8 + $0x388] ss:$16 sps:$4 sm:$0xff]  }
  0xe0   : > { %1698 = vmatpush1.bf16.msra.mxu0 %v3200_v59  ;;  %1781 = vmatprep.subr.bf16.mxu1 %v3211_v62  ;;  %v3352_v59 = vld [vmem:[#allocation10 + $0x64] ss:$8 sps:$4 sm:$0xff]  }
  0xe1   : > { %1699 = vmatprep.subr.bf16.mxu0 %v3208_v61  ;;  %v3350_v61 = vld [vmem:[#allocation10 + $0x60] ss:$8 sps:$4 sm:$0xff]   ;;  %v3274_v62 = vld [vmem:[#allocation8 + $0x3ac] ss:$16 sps:$4 sm:$0xff]  }
  0xe3   : > { %1782 = vmatpush1.bf16.msra.mxu1 %v3209_v0  ;;  %v3272_v0 = vld [vmem:[#allocation8 + $0x3a8] ss:$16 sps:$4 sm:$0xff]  }
  0xe4   : > { %1700 = vmatpush1.bf16.msra.mxu0 %v3206_v63  ;;  %1783 = vmatprep.subr.bf16.mxu1 %v3217_v2  ;;  %v3355_v63 = vld [vmem:[#allocation10 + $0x74] ss:$8 sps:$4 sm:$0xff]  }
  0xe5   : > { %1701 = vmatprep.subr.bf16.mxu0 %v3214_v1  ;;  %v3353_v1 = vld [vmem:[#allocation10 + $0x70] ss:$8 sps:$4 sm:$0xff]   ;;  %v3277_v2 = vld [vmem:[#allocation8 + $0x3cc] ss:$16 sps:$4 sm:$0xff]  }
  0xe7   : > { %1784 = vmatpush1.bf16.msra.mxu1 %v3215_v4  ;;  %v3275_v4 = vld [vmem:[#allocation8 + $0x3c8] ss:$16 sps:$4 sm:$0xff]  }
  0xe8   : > { %1702 = vmatpush1.bf16.msra.mxu0 %v3212_v3  ;;  %1785 = vmatprep.subr.bf16.mxu1 %v3223_v6  ;;  %v3358_v3 = vld [vmem:[#allocation10 + $0x84] ss:$8 sps:$4 sm:$0xff]  }
  0xe9   : > { %1703 = vmatprep.subr.bf16.mxu0 %v3220_v5  ;;  %v3356_v5 = vld [vmem:[#allocation10 + $0x80] ss:$8 sps:$4 sm:$0xff]   ;;  %v3280_v6 = vld [vmem:[#allocation8 + $0x3ec] ss:$16 sps:$4 sm:$0xff]  }
  0xeb   : > { %1786 = vmatpush1.bf16.msra.mxu1 %v3221_v8  ;;  %v3278_v8 = vld [vmem:[#allocation8 + $0x3e8] ss:$16 sps:$4 sm:$0xff]  }
  0xec   : > { %1704 = vmatpush1.bf16.msra.mxu0 %v3218_v7  ;;  %1787 = vmatprep.subr.bf16.mxu1 %v3229_v11  ;;  %v3361_v7 = vld [vmem:[#allocation10 + $0x94] ss:$8 sps:$4 sm:$0xff]  }
  0xed   : > { %1705 = vmatprep.subr.bf16.mxu0 %v3226_v9  ;;  %v3359_v9 = vld [vmem:[#allocation10 + $0x90] ss:$8 sps:$4 sm:$0xff]   ;;  %v3283_v11 = vld [vmem:[#allocation8 + $0x40c] ss:$16 sps:$4 sm:$0xff]  }
  0xef   : > { %1788 = vmatpush1.bf16.msra.mxu1 %v3227_v14  ;;  %v3281_v14 = vld [vmem:[#allocation8 + $0x408] ss:$16 sps:$4 sm:$0xff]  }
  0xf0   : > { %1706 = vmatpush1.bf16.msra.mxu0 %v3224_v12  ;;  %1798 = vmatprep.subr.bf16.mxu1 %v3232_v16  ;;  %v3364_v12 = vld [vmem:[#allocation10 + $0xa4] ss:$8 sps:$4 sm:$0xff]   ;;  %v3362_v16 = vld [vmem:[#allocation10 + $0xa0] ss:$8 sps:$4 sm:$0xff]  }
  0xf1   : > { %1716 = vmatprep.subr.bf16.mxu0 %v3238_v17  ;;  %v3367_v17 = vld [vmem:[#allocation10 + $0xb4] ss:$8 sps:$4 sm:$0xff]  }
  0xf2   : > { %1790 = vmatmul.mubr.bf16.vlgmr.msra.gmra.mrb[4].mxu1 %v3796_v10  ;;  %v3245_v10 = vld [vmem:[#allocation8 + $0x288] ss:$16 sps:$4 sm:$0xff]  }
  0xf3   : > { %1708 = vmatmul.mubr.bf16.vlgmr.msra.gmra.mrb[0].mxu0 %v3808_v18  ;;  %1799 = vmatpush1.bf16.msra.mxu1 %v3230_v19  ;;  %v3284_v19 = vld [vmem:[#allocation8 + $0x428] ss:$16 sps:$4 sm:$0xff]  }
  0xf4   : > { %1717 = vmatpush1.bf16.msra.mxu0 %v3236_v20  ;;  %1800 = vmatprep.subr.bf16.mxu1 %v3235_v21  ;;  %v3289_v20 = vld [vmem:[#allocation8 + $0x44c] ss:$16 sps:$4 sm:$0xff]   ;;  %v3365_v21 = vld [vmem:[#allocation10 + $0xb0] ss:$8 sps:$4 sm:$0xff]  }
  0xf5   : > { %1748 = vmatprep.mubr.bf16.mxu0 %v3572_v24  ;;  %1830 = vmatprep.mubr.bf16.mxu1 %v3790_v54  ;;  %v3251_v54 = vld [vmem:[#allocation8 + $0x2c8] ss:$16 sps:$4 sm:$0xff]  }
  0xf6   : > { %2333 = vmatprep.subr.bf16.mxu0 %v3334_v36  ;;  %v3305_v36 = vld [vmem:[#allocation8 + $0x508] ss:$16 sps:$4 sm:$0xff]  }
  0xf7   : > { %1801 = vmatpush1.bf16.msra.mxu1 %v3233_v22  ;;  %v3370_v22 = vld [vmem:[#allocation10 + $0xc4] ss:$8 sps:$4 sm:$0xff]  }
  0xf8   : > { %1802 = vmatprep.subr.bf16.mxu1 %v3241_v23  ;;  %v3287_v23 = vld [vmem:[#allocation8 + $0x448] ss:$16 sps:$4 sm:$0xff]  }
  0xfb   : > { %1803 = vmatpush1.bf16.msra.mxu1 %v3239_v25  ;;  %v3292_v25 = vld [vmem:[#allocation8 + $0x46c] ss:$16 sps:$4 sm:$0xff]  }
  0xfc   : > { %1804 = vmatprep.subr.bf16.mxu1 %v3244_v27  ;;  %v3373_v27 = vld [vmem:[#allocation10 + $0xd4] ss:$8 sps:$4 sm:$0xff]  }
  0xff   : > { %2864 = vmatmul.mubr.msk.bf16.vlgmr.msra.gmra.mrb[0].mxu0 %vm1589_vm1, %v3815_v29  ;;  %1805 = vmatpush1.bf16.msra.mxu1 %v3242_v28  ;;  %v3295_v28 = vld [vmem:[#allocation8 + $0x48c] ss:$16 sps:$4 sm:$0xff]  }
 0x100   : > { %1806 = vmatprep.subr.bf16.mxu1 %v3247_v30  ;;  %2334 = vmatpush1.bf16.msra.mxu0 %v3332_v35  ;;  %v3293_v30 = vld [vmem:[#allocation8 + $0x488] ss:$16 sps:$4 sm:$0xff]   ;;  %v3307_v35 = vld [vmem:[#allocation8 + $0x50c] ss:$16 sps:$4 sm:$0xff]  }
 0x101   : > { %2335 = vmatprep.subr.bf16.mxu0 %v3337_v38  ;;  %v3310_v38 = vld [vmem:[#allocation8 + $0x52c] ss:$16 sps:$4 sm:$0xff]  }
 0x103   : > { %1807 = vmatpush1.bf16.msra.mxu1 %v3245_v10  ;;  %v3298_v10 = vld [vmem:[#allocation8 + $0x4ac] ss:$16 sps:$4 sm:$0xff]  }
 0x104   : > { %1808 = vmatprep.subr.bf16.mxu1 %v3250_v31  ;;  %2336 = vmatpush1.bf16.msra.mxu0 %v3335_v40  ;;  %v3296_v31 = vld [vmem:[#allocation8 + $0x4a8] ss:$16 sps:$4 sm:$0xff]  }
 0x105   : > { %2337 = vmatprep.subr.bf16.mxu0 %v3340_v42  ;;  %v3374_v40 = vld [vmem:[#allocation10 + $0xe0] ss:$8 sps:$4 sm:$0xff]   ;;  %v3313_v42 = vld [vmem:[#allocation8 + $0x54c] ss:$16 sps:$4 sm:$0xff]  }
 0x107   : > { %1809 = vmatpush1.bf16.msra.mxu1 %v3248_v32  ;;  %v3301_v32 = vld [vmem:[#allocation8 + $0x4cc] ss:$16 sps:$4 sm:$0xff]  }
 0x108   : > { %1810 = vmatprep.subr.bf16.mxu1 %v3253_v33  ;;  %2338 = vmatpush1.bf16.msra.mxu0 %v3338_v44  ;;  %v3299_v33 = vld [vmem:[#allocation8 + $0x4c8] ss:$16 sps:$4 sm:$0xff]  }
 0x109   : > { %2339 = vmatprep.subr.bf16.mxu0 %v3343_v46  ;;  %v3377_v44 = vld [vmem:[#allocation10 + $0xf0] ss:$8 sps:$4 sm:$0xff]   ;;  %v3316_v46 = vld [vmem:[#allocation8 + $0x56c] ss:$16 sps:$4 sm:$0xff]  }
 0x10b   : > { %1811 = vmatpush1.bf16.msra.mxu1 %v3251_v54  ;;  %v3304_v54 = vld [vmem:[#allocation8 + $0x4ec] ss:$16 sps:$4 sm:$0xff]  }
 0x10c   : > { %1812 = vmatprep.subr.bf16.mxu1 %v3256_v34  ;;  %2340 = vmatpush1.bf16.msra.mxu0 %v3341_v48  ;;  %v3302_v34 = vld [vmem:[#allocation8 + $0x4e8] ss:$16 sps:$4 sm:$0xff]   ;;  %v3382_v48 = vld [vmem:[#allocation10 + $0x104] ss:$8 sps:$4 sm:$0xff]  }
 0x10d   : > { %2341 = vmatprep.subr.bf16.mxu0 %v3346_v50  ;;  %v3317_v50 = vld [vmem:[#allocation8 + $0x588] ss:$16 sps:$4 sm:$0xff]  }
 0x10f   : > { %1813 = vmatpush1.bf16.msra.mxu1 %v3254_v39  ;;  %v3376_v39 = vld [vmem:[#allocation10 + $0xe4] ss:$8 sps:$4 sm:$0xff]  }
 0x110   : > { %1814 = vmatprep.subr.bf16.mxu1 %v3259_v41  ;;  %2342 = vmatpush1.bf16.msra.mxu0 %v3344_v52  ;;  %v3308_v41 = vld [vmem:[#allocation8 + $0x528] ss:$16 sps:$4 sm:$0xff]  }
 0x111   : > { %2343 = vmatprep.subr.bf16.mxu0 %v3349_v55  ;;  %v3320_v52 = vld [vmem:[#allocation8 + $0x5a8] ss:$16 sps:$4 sm:$0xff]  }
 0x112   : > { %v3323_v55 = vld [vmem:[#allocation8 + $0x5c8] ss:$16 sps:$4 sm:$0xff]  }
 0x113   : > { %1815 = vmatpush1.bf16.msra.mxu1 %v3257_v43  ;;  %v3379_v43 = vld [vmem:[#allocation10 + $0xf4] ss:$8 sps:$4 sm:$0xff]  }
 0x114   : > { %1816 = vmatprep.subr.bf16.mxu1 %v3262_v45  ;;  %2344 = vmatpush1.bf16.msra.mxu0 %v3347_v57  ;;  %v3311_v45 = vld [vmem:[#allocation8 + $0x548] ss:$16 sps:$4 sm:$0xff]  }
 0x115   : > { %2345 = vmatprep.subr.bf16.mxu0 %v3352_v59  ;;  %v3326_v57 = vld [vmem:[#allocation8 + $0x5e8] ss:$16 sps:$4 sm:$0xff]  }
 0x116   : > { %v3329_v59 = vld [vmem:[#allocation8 + $0x608] ss:$16 sps:$4 sm:$0xff]  }
 0x117   : > { %1817 = vmatpush1.bf16.msra.mxu1 %v3260_v47  ;;  %v3314_v47 = vld [vmem:[#allocation8 + $0x568] ss:$16 sps:$4 sm:$0xff]  }
 0x118   : > { %1818 = vmatprep.subr.bf16.mxu1 %v3265_v49  ;;  %2346 = vmatpush1.bf16.msra.mxu0 %v3350_v61  ;;  %v3319_v49 = vld [vmem:[#allocation8 + $0x58c] ss:$16 sps:$4 sm:$0xff]  }
 0x119   : > { %2347 = vmatprep.subr.bf16.mxu0 %v3355_v63 }
 0x11b   : > { %1819 = vmatpush1.bf16.msra.mxu1 %v3263_v51  ;;  %v3322_v51 = vld [vmem:[#allocation8 + $0x5ac] ss:$16 sps:$4 sm:$0xff]  }
 0x11c   : > { %1820 = vmatprep.subr.bf16.mxu1 %v3268_v53  ;;  %2348 = vmatpush1.bf16.msra.mxu0 %v3353_v1  ;;  %v3325_v53 = vld [vmem:[#allocation8 + $0x5cc] ss:$16 sps:$4 sm:$0xff]  }
 0x11d   : > { %2349 = vmatprep.subr.bf16.mxu0 %v3358_v3 }
 0x11f   : > { %1821 = vmatpush1.bf16.msra.mxu1 %v3266_v56  ;;  %v3328_v56 = vld [vmem:[#allocation8 + $0x5ec] ss:$16 sps:$4 sm:$0xff]  }
 0x120   : > { %1822 = vmatprep.subr.bf16.mxu1 %v3271_v58  ;;  %2350 = vmatpush1.bf16.msra.mxu0 %v3356_v5  ;;  %v3331_v58 = vld [vmem:[#allocation8 + $0x60c] ss:$16 sps:$4 sm:$0xff]  }
 0x121   : > { %2351 = vmatprep.subr.bf16.mxu0 %v3361_v7 }
 0x123   : > { %1823 = vmatpush1.bf16.msra.mxu1 %v3269_v60 }
 0x124   : > { %1824 = vmatprep.subr.bf16.mxu1 %v3274_v62  ;;  %2352 = vmatpush1.bf16.msra.mxu0 %v3359_v9 }
 0x125   : > { %2353 = vmatprep.subr.bf16.mxu0 %v3364_v12 }
 0x127   : > { %1825 = vmatpush1.bf16.msra.mxu1 %v3272_v0  ;;  %v589_v0 = vlaneseq }
 0x128   : > { %1826 = vmatprep.subr.bf16.mxu1 %v3277_v2  ;;  %2354 = vmatpush1.bf16.msra.mxu0 %v3362_v16 }
 0x129   : > { %2355 = vmatprep.subr.bf16.mxu0 %v3367_v17  ;;  %v3826_v1 = vshrl.u32 %v589_v0, 7  ;;  %vm2454_vm6 = vcmp.lt.s32.totalorder %v589_v0, 256  ;;  %v2505_v0 = vld [vmem:[%s3895_s5] sm:$0x3] (!%p2932_p10) }
 0x12b   : > { %1827 = vmatpush1.bf16.msra.mxu1 %v3275_v4  ;;  %v3829_v2 = vsub.s32 0, %v3826_v1 }
 0x12c   : > { %1828 = vmatprep.subr.bf16.mxu1 %v3280_v6  ;;  %2356 = vmatpush1.bf16.msra.mxu0 %v3365_v21 }
 0x12d   : > { %2357 = vmatprep.subr.bf16.mxu0 %v3370_v22  ;;  %v3385_v22 = vld [vmem:[#allocation10 + $0x114] ss:$8 sps:$4 sm:$0xff]  }
 0x12f   : > { %1829 = vmatpush1.bf16.msra.mxu1 %v3278_v8 }
 0x130   : > { %1839 = vmatprep.subr.bf16.mxu1 %v3283_v11  ;;  %2358 = vmatpush1.bf16.msra.mxu0 %v3368_v26  ;;  %v3386_v26 = vld [vmem:[#allocation10 + $0x120] ss:$8 sps:$4 sm:$0xff]  }
 0x131   : > { %2359 = vmatprep.subr.bf16.mxu0 %v3373_v27  ;;  %v3391_v27 = vld [vmem:[#allocation10 + $0x134] ss:$8 sps:$4 sm:$0xff]  }
 0x132   : > { %1831 = vmatmul.mubr.bf16.vlgmr.msra.gmra.mrb[4].mxu1 %v3798_v13  ;;  %v3290_v13 = vld [vmem:[#allocation8 + $0x468] ss:$16 sps:$4 sm:$0xff]  }
 0x133   : > { %1840 = vmatpush1.bf16.msra.mxu1 %v3281_v14  ;;  %1871 = vmatprep.mubr.bf16.mxu1 %v3804_v37  ;;  %v3371_v37 = vld [vmem:[#allocation10 + $0xd0] ss:$8 sps:$4 sm:$0xff]  }
 0x134   : > { %1841 = vmatprep.subr.bf16.mxu1 %v3286_v15  ;;  %2360 = vmatpush1.bf16.msra.mxu0 %v3371_v37  ;;  %v3392_v37 = vld [vmem:[#allocation10 + $0x140] ss:$8 sps:$4 sm:$0xff]  }
 0x135   : > { %2361 = vmatprep.subr.bf16.mxu0 %v3376_v39  ;;  %v3412_v39 = vld [vmem:[#allocation10 + $0x1a4] ss:$8 sps:$4 sm:$0xff]  }
 0x137   : > { %1842 = vmatpush1.bf16.msra.mxu1 %v3284_v19 }
 0x138   : > { %1843 = vmatprep.subr.bf16.mxu1 %v3289_v20  ;;  %2362 = vmatpush1.bf16.msra.mxu0 %v3374_v40  ;;  %v3380_v20 = vld [vmem:[#allocation10 + $0x100] ss:$8 sps:$4 sm:$0xff]  }
 0x139   : > { %2363 = vmatprep.subr.bf16.mxu0 %v3379_v43  ;;  %v3410_v40 = vld [vmem:[#allocation10 + $0x1a0] ss:$8 sps:$4 sm:$0xff]   ;;  %v3418_v43 = vld [vmem:[#allocation10 + $0x1c4] ss:$8 sps:$4 sm:$0xff]  }
 0x13b   : > { %1844 = vmatpush1.bf16.msra.mxu1 %v3287_v23  ;;  %v3383_v23 = vld [vmem:[#allocation10 + $0x110] ss:$8 sps:$4 sm:$0xff]  }
 0x13c   : > { %1845 = vmatprep.subr.bf16.mxu1 %v3292_v25  ;;  %2364 = vmatpush1.bf16.msra.mxu0 %v3377_v44  ;;  %v3388_v25 = vld [vmem:[#allocation10 + $0x124] ss:$8 sps:$4 sm:$0xff]   ;;  %v3416_v44 = vld [vmem:[#allocation10 + $0x1c0] ss:$8 sps:$4 sm:$0xff]  }
 0x13d   : > { %2374 = vmatprep.subr.bf16.mxu0 %v3382_v48  ;;  %v3422_v48 = vld [vmem:[#allocation10 + $0x1e0] ss:$8 sps:$4 sm:$0xff]  }
 0x13f   : > { %1846 = vmatpush1.bf16.msra.mxu1 %v3290_v13  ;;  %v3389_v13 = vld [vmem:[#allocation10 + $0x130] ss:$8 sps:$4 sm:$0xff]  }
 0x140   : > { %1847 = vmatprep.subr.bf16.mxu1 %v3295_v28  ;;  %v3394_v28 = vld [vmem:[#allocation10 + $0x144] ss:$8 sps:$4 sm:$0xff]  }
 0x143   : > { %1848 = vmatpush1.bf16.msra.mxu1 %v3293_v30  ;;  %v3397_v30 = vld [vmem:[#allocation10 + $0x154] ss:$8 sps:$4 sm:$0xff]  }
 0x144   : > { %1849 = vmatprep.subr.bf16.mxu1 %v3298_v10  ;;  %v3395_v10 = vld [vmem:[#allocation10 + $0x150] ss:$8 sps:$4 sm:$0xff]  }
 0x147   : > { %1850 = vmatpush1.bf16.msra.mxu1 %v3296_v31  ;;  %v3400_v31 = vld [vmem:[#allocation10 + $0x164] ss:$8 sps:$4 sm:$0xff]  }
 0x148   : > { %1851 = vmatprep.subr.bf16.mxu1 %v3301_v32  ;;  %v3398_v32 = vld [vmem:[#allocation10 + $0x160] ss:$8 sps:$4 sm:$0xff]  }
 0x14b   : > { %1852 = vmatpush1.bf16.msra.mxu1 %v3299_v33  ;;  %v3403_v33 = vld [vmem:[#allocation10 + $0x174] ss:$8 sps:$4 sm:$0xff]  }
 0x14c   : > { %1853 = vmatprep.subr.bf16.mxu1 %v3304_v54  ;;  %v3401_v54 = vld [vmem:[#allocation10 + $0x170] ss:$8 sps:$4 sm:$0xff]  }
 0x14f   : > { %1854 = vmatpush1.bf16.msra.mxu1 %v3302_v34  ;;  %v3406_v34 = vld [vmem:[#allocation10 + $0x184] ss:$8 sps:$4 sm:$0xff]  }
 0x150   : > { %1855 = vmatprep.subr.bf16.mxu1 %v3307_v35  ;;  %v3404_v35 = vld [vmem:[#allocation10 + $0x180] ss:$8 sps:$4 sm:$0xff]  }
 0x153   : > { %1856 = vmatpush1.bf16.msra.mxu1 %v3305_v36  ;;  %v3409_v36 = vld [vmem:[#allocation10 + $0x194] ss:$8 sps:$4 sm:$0xff]  }
 0x154   : > { %1857 = vmatprep.subr.bf16.mxu1 %v3310_v38  ;;  %v3407_v38 = vld [vmem:[#allocation10 + $0x190] ss:$8 sps:$4 sm:$0xff]  }
 0x157   : > { %1858 = vmatpush1.bf16.msra.mxu1 %v3308_v41  ;;  %v3415_v41 = vld [vmem:[#allocation10 + $0x1b4] ss:$8 sps:$4 sm:$0xff]  }
 0x158   : > { %1859 = vmatprep.subr.bf16.mxu1 %v3313_v42  ;;  %v3413_v42 = vld [vmem:[#allocation10 + $0x1b0] ss:$8 sps:$4 sm:$0xff]  }
 0x15b   : > { %1860 = vmatpush1.bf16.msra.mxu1 %v3311_v45  ;;  %v3421_v45 = vld [vmem:[#allocation10 + $0x1d4] ss:$8 sps:$4 sm:$0xff]  }
 0x15c   : > { %1861 = vmatprep.subr.bf16.mxu1 %v3316_v46  ;;  %v3419_v46 = vld [vmem:[#allocation10 + $0x1d0] ss:$8 sps:$4 sm:$0xff]  }
 0x15f   : > { %1862 = vmatpush1.bf16.msra.mxu1 %v3314_v47  ;;  %v3424_v47 = vld [vmem:[#allocation10 + $0x1e4] ss:$8 sps:$4 sm:$0xff]  }
 0x160   : > { %1863 = vmatprep.subr.bf16.mxu1 %v3319_v49  ;;  %v3427_v49 = vld [vmem:[#allocation10 + $0x1f4] ss:$8 sps:$4 sm:$0xff]  }
 0x163   : > { %1864 = vmatpush1.bf16.msra.mxu1 %v3317_v50  ;;  %v3425_v50 = vld [vmem:[#allocation10 + $0x1f0] ss:$8 sps:$4 sm:$0xff]  }
 0x164   : > { %1865 = vmatprep.subr.bf16.mxu1 %v3322_v51  ;;  %v599_v51 = vsub.s32 2, %v3826_v1 }
 0x167   : > { %1866 = vmatpush1.bf16.msra.mxu1 %v3320_v52  ;;  %v603_v52 = vsub.s32 3, %v3826_v1 }
 0x168   : > { %1867 = vmatprep.subr.bf16.mxu1 %v3325_v53 }
 0x16b   : > { %1868 = vmatpush1.bf16.msra.mxu1 %v3323_v55 }
 0x16c   : > { %1869 = vmatprep.subr.bf16.mxu1 %v3328_v56 }
 0x16f   : > { %1870 = vmatpush1.bf16.msra.mxu1 %v3326_v57 }
 0x170   : > { %1880 = vmatprep.subr.bf16.mxu1 %v3331_v58 }
 0x172   : > { %1872 = vmatmul.mubr.bf16.vlgmr.msra.gmra.mrb[4].mxu1 %v3808_v18  ;;  %v3834_v18 = vld [vmem:[%s3892_s2] sm:$0xf] }
 0x173   : > { %1881 = vmatpush1.bf16.msra.mxu1 %v3329_v59  ;;  %1912 = vmatprep.mubr.bf16.mxu1 %v3572_v24  ;;  %v3837_v24 = vsub.s32 1, %v3826_v1  ;;  %v600_v53 = vrot.slane %v3834_v18, %v599_v51  ;;  %v604_v55 = vrot.slane %v3834_v18, %v603_v52  ;;  %v2457_v52 = vld [vmem:[#allocation4] sm:$0x3] }
 0x175   : > { %v596_v3 = vrot.slane %v3834_v18, %v3837_v24 }
 0x17e   : > { %2865 = vmatmul.mubr.msk.bf16.vlgmr.msra.gmra.mrb[4].mxu1 %vm1589_vm1, %v3815_v29  ;;  %v592_v29 = vrot.slane %v3834_v18, %v3829_v2  ;;  %v2001_v18 = vld [vmem:[%s3894_s4] sm:$0x3] }
 0x185   : > { %v1627_v60 = vpop.f32.mrb[0].mxu1 }
 0x186   : > { %v1629_v61 = vpop.f32.mrb[1].mxu1  ;;  %v1628_v4 = vadd.f32 %v1627_v60, %v592_v29 }
 0x187   : > { %v1631_v62 = vpop.f32.mrb[2].mxu1  ;;  %v1630_v5 = vadd.f32 %v1629_v61, %v596_v3 }
 0x188   : > { %v1632_v63 = vpop.f32.mrb[3].mxu1 }
 0x1d2   : > { %v1750_v6 = vpop.f32.mrb[0].mxu0 }
 0x1d3   : > { %v2937_v7 = vadd.f32 %v1750_v6, %v1628_v4  ;;  %v1752_v8 = vpop.f32.mrb[1].mxu0  ;;  %v2006_v6 = vrot.slane %v2001_v18, %v3829_v2 }
 0x1d4   : > { %v2939_v9 = vadd.f32 %v1752_v8, %v1630_v5  ;;  %v1754_v11 = vpop.f32.mrb[2].mxu0 }
 0x1d5   : > { %vm1921_vm2 = vcmp.gt.f32.partialorder %v2937_v7, 0.0  ;;  %v1925_v12 = vmul.f32 0.2, %v2937_v7  ;;  %v1755_v14 = vpop.f32.mrb[3].mxu0 }
 0x1d6   : > { %vm1922_vm3 = vcmp.gt.f32.partialorder %v2939_v9, 0.0  ;;  %v1926_v15 = vmul.f32 0.2, %v2939_v9 }
 0x1d7   : > { %v1929_v16 = vsel %vm1921_vm2, %v2937_v7, %v1925_v12  ;;  %v2010_v7 = vrot.slane %v2001_v18, %v3837_v24 }
 0x1d8   : > { %v1930_v17 = vsel %vm1922_vm3, %v2939_v9, %v1926_v15  ;;  %v1933_v21 = vpack.c.bf16 %v1929_v16, %v1929_v16 }
 0x1d9   : > { %v1934_v19 = vpack.c.bf16 %v1930_v17, %v1930_v17 }
 0x1db   : > { %2365 = vmatprep.mubr.bf16.mxu0 %v1934_v19 }
 0x1dc   : > { %2366 = vmatmul.mubr.bf16.vlgmr.msra.gmra.mrb[4].mxu0 %v1933_v21 }
 0x1dd   : > { %2375 = vmatpush1.bf16.msra.mxu0 %v3380_v20 }
 0x1de   : > { %2376 = vmatprep.subr.bf16.mxu0 %v3385_v22 }
 0x1e1   : > { %2377 = vmatpush1.bf16.msra.mxu0 %v3383_v23 }
 0x1e2   : > { %2378 = vmatprep.subr.bf16.mxu0 %v3388_v25  ;;  %v3573_v25 = vmov 1966171168  }
 0x1e5   : > { %2379 = vmatpush1.bf16.msra.mxu0 %v3386_v26  ;;  %v2437_v26 = vunpack.c.l.s4 %v3573_v25 }
 0x1e6   : > { %2380 = vmatprep.subr.bf16.mxu0 %v3391_v27 }
 0x1e9   : > { %2381 = vmatpush1.bf16.msra.mxu0 %v3389_v13 }
 0x1ea   : > { %2382 = vmatprep.subr.bf16.mxu0 %v3394_v28 }
 0x1ed   : > { %2383 = vmatpush1.bf16.msra.mxu0 %v3392_v37 }
 0x1ee   : > { %2384 = vmatprep.subr.bf16.mxu0 %v3397_v30 }
 0x1f1   : > { %2385 = vmatpush1.bf16.msra.mxu0 %v3395_v10 }
 0x1f2   : > { %2386 = vmatprep.subr.bf16.mxu0 %v3400_v31 }
 0x1f5   : > { %2387 = vmatpush1.bf16.msra.mxu0 %v3398_v32 }
 0x1f6   : > { %2388 = vmatprep.subr.bf16.mxu0 %v3403_v33  ;;  %v2438_v33 = vunpack.c.0.s8 %v2437_v26 }
 0x1f9   : > { %2389 = vmatpush1.bf16.msra.mxu0 %v3401_v54 }
 0x1fa   : > { %2390 = vmatprep.subr.bf16.mxu0 %v3406_v34 }
 0x1fd   : > { %2391 = vmatpush1.bf16.msra.mxu0 %v3404_v35 }
 0x1fe   : > { %2392 = vmatprep.subr.bf16.mxu0 %v3409_v36 }
 0x201   : > { %2393 = vmatpush1.bf16.msra.mxu0 %v3407_v38 }
 0x202   : > { %2394 = vmatprep.subr.bf16.mxu0 %v3412_v39 }
 0x205   : > { %2395 = vmatpush1.bf16.msra.mxu0 %v3410_v40 }
 0x206   : > { %2396 = vmatprep.subr.bf16.mxu0 %v3415_v41 }
 0x209   : > { %2397 = vmatpush1.bf16.msra.mxu0 %v3413_v42  ;;  %v2441_v42 = vsub.s32 %v2438_v33, %v3826_v1 }
 0x20a   : > { %2398 = vmatprep.subr.bf16.mxu0 %v3418_v43 }
 0x20d   : > { %2399 = vmatpush1.bf16.msra.mxu0 %v3416_v44 }
 0x20e   : > { %2400 = vmatprep.subr.bf16.mxu0 %v3421_v45 }
 0x211   : > { %2401 = vmatpush1.bf16.msra.mxu0 %v3419_v46 }
 0x212   : > { %2402 = vmatprep.subr.bf16.mxu0 %v3424_v47 }
 0x215   : > { %2403 = vmatpush1.bf16.msra.mxu0 %v3422_v48 }
 0x216   : > { %2404 = vmatprep.subr.bf16.mxu0 %v3427_v49  ;;  %v2420_v49 = vld [vmem:[#allocation3] sm:$0x3] }
 0x219   : > { %2405 = vmatpush1.bf16.msra.mxu0 %v3425_v50 }
 0x251   : > { %v1914_v56 = vpop.f32.mrb[4].mxu1 }
 0x252   : > { %v2940_v57 = vadd.f32 %v1914_v56, %v600_v53  ;;  %v1916_v58 = vpop.f32.mrb[5].mxu1 }
 0x253   : > { %v2941_v59 = vadd.f32 %v1916_v58, %v604_v55  ;;  %v1918_v60 = vpop.f32.mrb[6].mxu1 }
 0x254   : > { %vm1923_vm4 = vcmp.gt.f32.partialorder %v2940_v57, 0.0  ;;  %v1927_v61 = vmul.f32 0.2, %v2940_v57  ;;  %v1919_v62 = vpop.f32.mrb[7].mxu1 }
 0x255   : > { %vm1924_vm5 = vcmp.gt.f32.partialorder %v2941_v59, 0.0  ;;  %v1928_v63 = vmul.f32 0.2, %v2941_v59 }
 0x256   : > { %v1931_v29 = vsel %vm1923_vm4, %v2940_v57, %v1927_v61 }
 0x257   : > { %v1932_v3 = vsel %vm1924_vm5, %v2941_v59, %v1928_v63  ;;  %v1935_v5 = vpack.c.bf16 %v1931_v29, %v1931_v29 }
 0x258   : > { %v1936_v4 = vpack.c.bf16 %v1932_v3, %v1932_v3 }
 0x25a   : > { %2406 = vmatprep.mubr.bf16.mxu0 %v1936_v4  ;;  %v2507_v4 = vld [vmem:[%s3896_s6] sm:$0x3] (!%p2932_p10) }
 0x25b   : > { %2407 = vmatmul.mubr.bf16.vlgmr.msra.gmra.mrb[4].mxu0 %v1935_v5 }
 0x32e   : > { %v2408_v8 = vpop.f32.mrb[4].mxu0 }
 0x32f   : > { %v2942_v9 = vadd.f32 %v2408_v8, %v2006_v6  ;;  %v2410_v11 = vpop.f32.mrb[5].mxu0 }
 0x330   : > { %v2943_v12 = vadd.f32 %v2410_v11, %v2010_v7  ;;  %v2412_v14 = vpop.f32.mrb[6].mxu0 }
 0x331   : > { %2418 = vst [vmem:[%s2417_s14] sm:$0xff] %v2942_v9  ;;  %v2421_v15 = vrot.slane %v2942_v9, 4  ;;  %v2458_v16 = vmul.f32 %v2942_v9, %v2942_v9  ;;  %v2413_v17 = vpop.f32.mrb[7].mxu0 }
 0x332   : > { %2419 = vst [vmem:[%s2417_s14 + $0x8] sm:$0xff] %v2943_v12  ;;  %v2427_v19 = vrot.slane %v2943_v12, 4  ;;  %v2459_v20 = vmul.f32 %v2943_v12, %v2943_v12 }
 0x333   : > { %v2422_v21 = vadd.f32 %v2942_v9, %v2421_v15  ;;  %v2460_v22 = vrot.slane %v2458_v16, 4 }
 0x334   : > { %v2428_v23 = vadd.f32 %v2943_v12, %v2427_v19  ;;  %v2466_v27 = vrot.slane %v2459_v20, 4  ;;  %v2510_v19 = vld [vmem:[%s3897_s7] sm:$0x3] (!%p2932_p10) }
 0x335   : > { %v2423_v13 = vrot.slane %v2422_v21, 2  ;;  %v2461_v28 = vadd.f32 %v2460_v22, %v2458_v16 }
 0x336   : > { %v2429_v37 = vrot.slane %v2428_v23, 2  ;;  %v2467_v30 = vadd.f32 %v2466_v27, %v2459_v20  ;;  %v2550_v27 = vrot.slane (!%p2932_p10), %v2510_v19, %v3829_v2 }
 0x337   : > { %v2424_v10 = vadd.f32 %v2423_v13, %v2422_v21  ;;  %v2462_v31 = vrot.slane %v2461_v28, 2  ;;  %v2554_v13 = vrot.slane (!%p2932_p10), %v2510_v19, %v3837_v24 }
 0x338   : > { %v2430_v32 = vadd.f32 %v2429_v37, %v2428_v23  ;;  %v2468_v54 = vrot.slane %v2467_v30, 2 }
 0x339   : > { %v2425_v34 = vrot.slane %v2424_v10, 1  ;;  %v2463_v35 = vadd.f32 %v2462_v31, %v2461_v28  ;;  %v2512_v5 = vld [vmem:[#allocation2] sm:$0xff] (!%p2932_p10)  ;;  %v2513_v18 = vld [vmem:[#allocation2 + $0x8] sm:$0xff] (!%p2932_p10)  ;;  %v2573_v6 = vld [vmem:[#allocation2 + $0x10] sm:$0xff] (!%p2932_p10) }
 0x33a   : > { %v2431_v36 = vrot.slane %v2430_v32, 1  ;;  %v2469_v38 = vadd.f32 %v2468_v54, %v2467_v30  ;;  %v2574_v11 = vld [vmem:[#allocation2 + $0x18] sm:$0xff] (!%p2932_p10) }
 0x33b   : > { %v2426_v39 = vadd.f32 %v2425_v34, %v2424_v10  ;;  %v2464_v40 = vrot.slane %v2463_v35, 1 }
 0x33c   : > { %v2432_v41 = vadd.f32 %v2431_v36, %v2430_v32  ;;  %v2470_v43 = vrot.slane %v2469_v38, 1 }
 0x33d   : > { %v2465_v44 = vadd.f32 %v2464_v40, %v2463_v35 }
 0x33e   : > { %v2435_v45 = vcombine.low %v2426_v39, %v2432_v41  ;;  %v2471_v46 = vadd.f32 %v2470_v43, %v2469_v38 }
 0x340   : > { %v2442_v47 = vrot.slane %v2435_v45, %v2441_v42  ;;  %v2474_v48 = vcombine.low %v2465_v44, %v2471_v46 }
 0x342   : > { %v2449_v50 = vrot.slane %v2442_v47, %v2441_v42  ;;  %v2481_v51 = vrot.slane %v2474_v48, %v2441_v42  ;;  %2495 = sbr.rel (%p2932_p10) target bundleno = 1061 (0x425), region = 76 }
 0x344   : > { %v2451_v53 = vadd.f32 %v2449_v50, %v2420_v49  ;;  %v2488_v55 = vrot.slane %v2481_v51, %v2441_v42 }
 0x346   : > { %2456 = vst.msk [vmem:[#allocation3] sm:$0x3] %vm2454_vm6, %v2451_v53  ;;  %v2490_v56 = vadd.f32 %v2488_v55, %v2457_v52 }
 0x348   : > { %2491 = vst.msk [vmem:[#allocation4] sm:$0x3] %vm2454_vm6, %v2490_v56 }
 0x34d   : > { %v2496_v1 = vld [vmem:[#allocation3] sm:$0x3] }
 0x34e   : > { %v2497_v58 = vmul.f32 0.0625, %v2496_v1 }
 0x34f   : > { %v2498_v57 = vld [vmem:[#allocation4] sm:$0x3] }
 0x350   : > { %v2499_v59 = vmul.f32 0.0625, %v2498_v57  ;;  %v2500_v60 = vmul.f32 %v2497_v58, %v2497_v58 }
 0x352   : > { %v2501_v61 = vsub.f32 %v2499_v59, %v2500_v60 }
 0x354   : > { %v2502_v62 = vmax.f32 %v2501_v61, 0.0 }
 0x356   : > { %v2503_v63 = vadd.f32 1e-05, %v2502_v62 }
 0x358   : > { %3428 = vrsqrt.f32 %v2503_v63 }
 0x362   : > { %v3429_v29 = vpop.eup %3428 }
 0x363   : > { %v2506_v3 = vmul.f32 %v3429_v29, %v2505_v0 }
 0x365   : > { %v2508_v7 = vmul.f32 %v2506_v3, %v2497_v58  ;;  %v2518_v8 = vrot.slane %v2506_v3, %v3829_v2  ;;  %v2522_v9 = vrot.slane %v2506_v3, %v3837_v24 }
 0x367   : > { %v2509_v12 = vsub.f32 %v2507_v4, %v2508_v7  ;;  %v2525_v14 = vmul.f32 %v2518_v8, %v2512_v5  ;;  %v2526_v15 = vmul.f32 %v2522_v9, %v2513_v18  ;;  %v2575_v16 = vmul.f32 %v2573_v6, %v2518_v8 }
 0x368   : > { %v2576_v17 = vmul.f32 %v2574_v11, %v2522_v9 }
 0x369   : > { %v2531_v20 = vrot.slane %v2509_v12, %v3829_v2  ;;  %v2535_v21 = vrot.slane %v2509_v12, %v3837_v24  ;;  %v2562_v24 = vstv %s2511_s21 }
 0x36b   : > { %v2538_v22 = vadd.f32 %v2531_v20, %v2525_v14  ;;  %v2539_v23 = vadd.f32 %v2535_v21, %v2526_v15  ;;  %v2577_v25 = vadd.f32 %v2575_v16, %v2531_v20  ;;  %v2578_v26 = vadd.f32 %v2576_v17, %v2535_v21 }
 0x36d   : > { %vm2540_vm7 = vcmp.gt.f32.partialorder %v2538_v22, 0.0  ;;  %vm2541_vm8 = vcmp.gt.f32.partialorder %v2539_v23, 0.0  ;;  %v2542_v28 = vmul.f32 0.2, %v2538_v22  ;;  %v2543_v37 = vmul.f32 0.2, %v2539_v23 }
 0x36e   : > { %vm2579_vm9 = vcmp.gt.f32.partialorder %v2577_v25, 0.0  ;;  %vm2580_vm10 = vcmp.gt.f32.partialorder %v2578_v26, 0.0  ;;  %v2581_v30 = vmul.f32 0.2, %v2577_v25  ;;  %v2582_v10 = vmul.f32 0.2, %v2578_v26 }
 0x36f   : > { %v2544_v31 = vsel %vm2540_vm7, %v2538_v22, %v2542_v28  ;;  %v2545_v32 = vsel %vm2541_vm8, %v2539_v23, %v2543_v37 }
 0x370   : > { %v2557_v33 = vmul.f32 %v2550_v27, %v2544_v31  ;;  %v2558_v54 = vmul.f32 %v2554_v13, %v2545_v32  ;;  %v2583_v34 = vsel %vm2579_vm9, %v2577_v25, %v2581_v30  ;;  %v2584_v35 = vsel %vm2580_vm10, %v2578_v26, %v2582_v10 }
 0x371   : > { %v2585_v36 = vmul.f32 %v2583_v34, %v2550_v27  ;;  %v2586_v38 = vmul.f32 %v2584_v35, %v2554_v13 }
 0x372   : > { %v2559_v39 = vadd.f32 %v2558_v54, %v2557_v33 }
 0x373   : > { %v2587_v2 = vadd.f32 %v2586_v38, %v2585_v36 }
 0x374   : > { %2560 = vadd.xlane.f32.xlu0 %v2559_v39 }
 0x378   : > { %2588 = vadd.xlane.f32.xlu0 %v2587_v2 }
 0x401   : > { %v2561_v40 = vpop.xlane.xlu0 %2560 }
 0x402   : > { %v2563_v41 = vadd.f32 %v2562_v24, %v2561_v40 }
 0x404   : > { %v2564_v42 = vsub.f32 0.0, %v2563_v41 }
 0x405   : > { %v2589_v43 = vpop.xlane.xlu0 %2588 }
 0x406   : > { %v2565_v44 = vmul.f32 1.442695, %v2564_v42  ;;  %v2590_v45 = vadd.f32 %v2589_v43, %v2562_v24 }
 0x408   : > { %3430 = vpow2.f32 %v2565_v44  ;;  %v2591_v46 = vsub.f32 0.0, %v2590_v45 }
 0x40a   : > { %v2592_v47 = vmul.f32 1.442695, %v2591_v46 }
 0x40c   : > { %3432 = vpow2.f32 %v2592_v47 }
 0x412   : > { %v3431_v48 = vpop.eup %3430 }
 0x413   : > { %v2567_v49 = vadd.f32 1.0, %v3431_v48 }
 0x415   : > { %3434 = vrcp.f32 %v2567_v49 }
 0x416   : > { %v3433_v50 = vpop.eup %3432 }
 0x417   : > { %v2594_v51 = vadd.f32 1.0, %v3433_v50 }
 0x419   : > { %3436 = vrcp.f32 %v2594_v51 }
 0x41f   : > { %v3435_v52 = vpop.eup %3434 }
 0x420   : > { %2571 = vst.msk [vmem:[%s3899_s9] sm:$0xff] %vm2570_vm11, %v3435_v52 }
 0x423   : > { %v3437_v53 = vpop.eup %3436 }
 0x424   : > { %2597 = vst.msk [vmem:[%s3899_s9 + $0x8] sm:$0xff] %vm2570_vm11, %v3437_v53 }
 0x425 PF: > { %s3912_s10 = smov %s3721_s11  ;;  %p21_p9 = scmp.ge.s32.totalorder %s3721_s11, 4  }
 0x426   : > { %s3913_s11 = smov %s3554_s12  ;;  %s3914_s12 = smov %s3558_s13 }
 0x427   : > { %s3915_s13 = smov %s3730_s22  ;;  %s3916_s14 = smov %s3912_s10 }
 0x428   :  { %23 = sbr.rel (!%p21_p9) target bundleno = 6 (0x6), region = 110 }
 0x42f   :  { %2609 = vsyncpa [#allocation7], 1 }
 0x430   :  { %2611 = vsyncpa [#allocation7 + $0x1], 1 }
 0x431   :  { %2612 = vsyncpa [#allocation9], 1 }

</bundles_post_ra>
